<compile_context>
chip_gen: v7x
topology: tpu7x:2x2x1
jax: 0.10.0
libtpu: 0.0.40
codegen_flags: <defaults>
</compile_context>

<pallas_src>
import jax
import jax.numpy as jnp
from jax import lax
from jax.experimental import pallas as pl
from jax.experimental.pallas import tpu as pltpu

K_NEIGHBORS = 4
LEAKY_SLOPE = 0.1
BN_EPS = 1e-5


# ----------------------------------------------------------------------------
# chip-aware sizing helpers
# ----------------------------------------------------------------------------
def _vmem_budget_bytes():
    """Per-pallas_call live-VMEM budget, keyed off the actual TPU generation."""
    try:
        phys = int(getattr(pltpu.get_tpu_info(), "vmem_capacity_bytes",
                           128 << 20))
    except Exception:                     # non-TPU / interpret fallback
        phys = 128 << 20
    if phys <= (64 << 20):                # v7x-class parts: 64 MiB physical/core
        return 44 << 20
    return 64 << 20                       # v5e / v6e: 128 MiB physical


def _pick_tile(n, cap):
    """Largest tile in {4096..128} that divides n and is <= cap, else n itself."""
    for t in (4096, 2048, 1024, 512, 256, 128):
        if t <= cap and n % t == 0:
            return t
    # TODO(synk): add a masked remainder-tile path for huge N that is not a
    #             multiple of 128; today such N falls back to one block/axis.
    return n


# ----------------------------------------------------------------------------
# Kernel 1: fused pairwise negative squared (x, y) distance + top-4 selection.
#   grid = (B, N // TILE_R, N // TILE_C); the column axis carries a running
#   top-4 (values + indices) in VMEM scratch; only (B, N, 4) int32 hits HBM.
# ----------------------------------------------------------------------------
def _knn_select_kernel(rows_ref, cols_ref, idx_ref, bval_ref, bidx_ref):
    # rows_ref: (TR, 2)  xy of this row strip (points-major)
    # cols_ref: (2, TC)  xy of this column strip (channels-first, lane-dense)
    # idx_ref:  (TR, 4)  int32 output, written on the last column step
    # bval_ref/bidx_ref: (TR, 4) running top-4 value / index carry (scratch)
    c = pl.program_id(2)

    @pl.when(c == 0)
    def _():
        bval_ref[...] = jnp.full_like(bval_ref, -jnp.inf)
        bidx_ref[...] = jnp.zeros_like(bidx_ref)

    # negative squared distance with the torch formula -(xx - 2*inner + xx^T);
    # K=2 contraction done with VPU broadcast FMAs (no MXU).
    x0r = rows_ref[:, 0:1]
    x1r = rows_ref[:, 1:2]
    x0c = cols_ref[0:1, :]
    x1c = cols_ref[1:2, :]
    inner = 2.0 * (x0r * x0c + x1r * x1c)            # (TR, TC)
    xx_r = x0r * x0r + x1r * x1r                     # (TR, 1)
    xx_c = x0c * x0c + x1c * x1c                     # (1, TC)
    vals = -(xx_r - inner + xx_c)                    # (TR, TC)

    tc = vals.shape[1]
    col_row = c * tc + lax.broadcasted_iota(jnp.int32, (1, tc), 1)   # (1, TC)
    big_i = jnp.int32(jnp.iinfo(jnp.int32).max)

    # block-local top-4: 4 rounds of (lane max, lowest-index argmax, mask out).
    # the reductions ride the XLU, which is idle in this VPU-bound body.
    blk_v, blk_i = [], []
    for _ in range(K_NEIGHBORS):
        m = jnp.max(vals, axis=1, keepdims=True)                      # (TR, 1)
        at_m = vals == m
        a = jnp.min(jnp.where(at_m, col_row, big_i), axis=1, keepdims=True)
        blk_v.append(m)
        blk_i.append(a)
        vals = jnp.where(col_row == a, -jnp.inf, vals)

    # merge carried (descending) top-4 with block (descending) top-4:
    # bitonic top-4 merge = 8 compare-exchanges on narrow (TR, 1) columns.
    cv = [bval_ref[:, j:j + 1] for j in range(K_NEIGHBORS)]
    ci = [bidx_ref[:, j:j + 1] for j in range(K_NEIGHBORS)]
    mv, mi = [], []
    for j in range(K_NEIGHBORS):          # bitonic split: keep the 4 largest
        a_v, a_i = cv[j], ci[j]
        b_v, b_i = blk_v[K_NEIGHBORS - 1 - j], blk_i[K_NEIGHBORS - 1 - j]
        take = a_v >= b_v                 # carried indices are always lower
        mv.append(jnp.where(take, a_v, b_v))
        mi.append(jnp.where(take, a_i, b_i))

    def _ce(p, q):                        # full compare-exchange (descending)
        take = mv[p] >= mv[q]
        pv = jnp.where(take, mv[p], mv[q])
        qv = jnp.where(take, mv[q], mv[p])
        pi = jnp.where(take, mi[p], mi[q])
        qi = jnp.where(take, mi[q], mi[p])
        mv[p], mv[q], mi[p], mi[q] = pv, qv, pi, qi

    _ce(0, 2)                             # sort the 4 bitonic survivors (k=4)
    _ce(1, 3)
    _ce(0, 1)
    _ce(2, 3)

    for j in range(K_NEIGHBORS):
        bval_ref[:, j:j + 1] = mv[j]
        bidx_ref[:, j:j + 1] = mi[j]

    @pl.when(c == pl.num_programs(2) - 1)
    def _():
        idx_ref[...] = bidx_ref[...]


def knn_indices(xyz):
    """xyz: (B, 3, N) channels-first -> (B, N, 4) int32 nearest-neighbour
    indices by (x, y) distance, nearest first (same order as torch.topk)."""
    B, _, N = xyz.shape
    if N < K_NEIGHBORS:
        raise ValueError("GeometricUnit needs at least k=4 points")
    xy_cf = xyz[:, 0:2, :]                            # (B, 2, N)
    xy_pm = jnp.transpose(xy_cf, (0, 2, 1))           # (B, N, 2), tiny

    budget = _vmem_budget_bytes()
    # ~8 live (tile_r, tile_c) f32 temporaries in the selection body; use ~half
    # the budget for them and leave the rest as pipelining head-room.
    cells = max(128 * 128, (budget // 2) // (8 * 4))
    tile_r = _pick_tile(N, 256)
    tile_c = _pick_tile(N, max(128, cells // max(tile_r, 1)))

    flops = 23 * B * N * N                # distance + in-VMEM top-4 selection
    bytes_acc = 4 * B * (2 * N * (N // tile_r) + 2 * N + K_NEIGHBORS * N)

    return pl.pallas_call(
        _knn_select_kernel,
        out_shape=jax.ShapeDtypeStruct((B, N, K_NEIGHBORS), jnp.int32),
        grid=(B, N // tile_r, N // tile_c),
        in_specs=[
            pl.BlockSpec((None, tile_r, 2), lambda b, r, c: (b, r, 0)),
            pl.BlockSpec((None, 2, tile_c), lambda b, r, c: (b, 0, c)),
        ],
        out_specs=pl.BlockSpec((None, tile_r, K_NEIGHBORS),
                               lambda b, r, c: (b, r, 0)),
        scratch_shapes=[
            pltpu.VMEM((tile_r, K_NEIGHBORS), jnp.float32),
            pltpu.VMEM((tile_r, K_NEIGHBORS), jnp.int32),
        ],
        compiler_params=pltpu.CompilerParams(
            dimension_semantics=("parallel", "parallel", "arbitrary"),
            vmem_limit_bytes=budget),
        cost_estimate=pl.CostEstimate(flops=flops, transcendentals=0,
                                      bytes_accessed=bytes_acc),
    )(xy_pm, xy_cf)


# ----------------------------------------------------------------------------
# Kernel 2: Laplacian feature -> Linear(3,3) -> BatchNorm1d(n_points)
# (training-mode batch stats) -> LeakyReLU(0.1) -> residual add.
# Batch is folded into the sublane axis: (B, 3, N) -> (B*3, N).
# ----------------------------------------------------------------------------
def _geo_unit_kernel(xyz_ref, mean_ref, w_ref, b_ref, g_ref, beta_ref, out_ref):
    # xyz_ref/mean_ref/out_ref: (R, T) with R = B*3 folded rows
    # w_ref: (R, R) block-diagonal Linear(3,3); b_ref: (R, 1)
    # g_ref/beta_ref: (1, T) per-point BatchNorm affine parameters
    R = xyz_ref.shape[0]
    xyz = xyz_ref[...]
    feat = xyz - mean_ref[...]                            # Laplacian feature

    # Linear(3,3) as R broadcast FMAs on the VPU (no MXU for a 3x3 contraction).
    acc = w_ref[:, 0:1] * feat[0:1, :]
    for j in range(1, R):
        acc = acc + w_ref[:, j:j + 1] * feat[j:j + 1, :]
    trans = acc + b_ref[...]

    # BatchNorm1d(n_points): per-point stats over the folded (batch, feature)
    # sublane axis (cross-sublane XLU reductions).  Exact per N-tile.
    inv = 1.0 / float(R)
    mu = jnp.sum(trans, axis=0, keepdims=True) * inv      # (1, T)
    d = trans - mu
    var = jnp.sum(d * d, axis=0, keepdims=True) * inv     # (1, T)
    scale = lax.rsqrt(var + BN_EPS) * g_ref[...]          # narrow row first
    bn = d * scale + beta_ref[...]

    act = jnp.where(bn >= 0.0, bn, LEAKY_SLOPE * bn)      # LeakyReLU(0.1)
    out_ref[...] = xyz + act                              # residual


def geo_unit_core(xyz, nbr_mean, w, b, gamma, beta):
    """xyz, nbr_mean: (B, 3, N) channels-first -> (B, 3, N)."""
    B, C, N = xyz.shape
    R = B * C
    xyz_f = xyz.reshape(R, N)                 # fold batch into sublanes
    mean_f = nbr_mean.reshape(R, N)
    wbig = jnp.kron(jnp.eye(B, dtype=w.dtype), w)         # (R, R) block-diag
    bbig = jnp.tile(jnp.reshape(b, (C, 1)), (B, 1))       # (R, 1)

    budget = _vmem_budget_bytes()
    # 3 (R, tile) f32 streams, double-buffered, plus temporary head-room.
    tile = _pick_tile(N, max(128, min(8192, budget // max(1, 24 * R * 4))))
    if N // tile == 1 and N % 256 == 0:
        tile = N // 2                          # >=2 parallel steps (v7x: 2 TCs)

    flops = N * R * (2 * R + 12)
    bytes_acc = 4 * (3 * R * N + 2 * N + R * R + R)

    out_f = pl.pallas_call(
        _geo_unit_kernel,
        out_shape=jax.ShapeDtypeStruct((R, N), jnp.float32),
        grid=(N // tile,),
        in_specs=[
            pl.BlockSpec((R, tile), lambda i: (0, i)),     # xyz (folded)
            pl.BlockSpec((R, tile), lambda i: (0, i)),     # neighbour mean
            pl.BlockSpec((R, R), lambda i: (0, 0)),        # block-diag W
            pl.BlockSpec((R, 1), lambda i: (0, 0)),        # bias
            pl.BlockSpec((1, tile), lambda i: (0, i)),     # gamma
            pl.BlockSpec((1, tile), lambda i: (0, i)),     # beta
        ],
        out_specs=pl.BlockSpec((R, tile), lambda i: (0, i)),
        compiler_params=pltpu.CompilerParams(
            dimension_semantics=("parallel",),
            vmem_limit_bytes=budget),
        cost_estimate=pl.CostEstimate(flops=flops, transcendentals=N,
                                      bytes_accessed=bytes_acc),
    )(xyz_f, mean_f, wbig, bbig, gamma.reshape(1, N), beta.reshape(1, N))
    return out_f.reshape(B, C, N)


# ----------------------------------------------------------------------------
# Full forward
# ----------------------------------------------------------------------------
@jax.jit
def geometric_unit_forward(xyz, w, b, gamma, beta):
    """xyz: (B, 3, N) float32  ->  (B, 3, N) float32 (featureType='Laplacian')."""
    B, C, N = xyz.shape
    k = K_NEIGHBORS

    idx = knn_indices(xyz)                                   # fused dist + top-4

    # gather neighbour coords exactly like torch: xyz[b][:, flatten(idx)] then
    # the C-order .view(N, k, 3) reinterpretation of the (3, N*k) block.
    # TODO(synk): this gather (and its mean) stays in XLA because the .view
    #             scrambles the (channel, point) pairing; it is only O(N*k).
    flat = idx.reshape(B, N * k)
    local = jax.vmap(lambda pts, f: pts[:, f])(xyz, flat)        # (B, 3, N*k)
    local = local.reshape(B, N, k, C)                            # (B, N, k, 3)
    nbr_mean = jnp.transpose(jnp.mean(local, axis=2), (0, 2, 1)) # (B, 3, N)

    return geo_unit_core(xyz, nbr_mean, w, b, gamma, beta)


# ----------------------------------------------------------------------------
# Pure-JAX references (mirror the PyTorch forward) for validation
# ----------------------------------------------------------------------------
def _ref_negdist(xyz):
    x0 = xyz[:, 0, :]
    x1 = xyz[:, 1, :]
    inner = 2.0 * (x0[:, :, None] * x0[:, None, :]
                   + x1[:, :, None] * x1[:, None, :])
    xx = x0 * x0 + x1 * x1
    return -(xx[:, :, None] - inner + xx[:, None, :])


def _ref_forward_from_idx(xyz, idx, w, b, gamma, beta):
    B, C, N = xyz.shape
    k = idx.shape[-1]
    flat = idx.reshape(B, N * k)
    local = jax.vmap(lambda pts, f: pts[:, f])(xyz, flat).reshape(B, N, k, C)
    feat = jnp.transpose(xyz, (0, 2, 1)) - local.mean(axis=2)        # (B, N, 3)
    trans = feat @ w.T + b
    mu = trans.mean(axis=(0, 2), keepdims=True)
    var = ((trans - mu) ** 2).mean(axis=(0, 2), keepdims=True)
    bn = (trans - mu) / jnp.sqrt(var + BN_EPS) * gamma[None, :, None] \
        + beta[None, :, None]
    act = jnp.where(bn >= 0.0, bn, LEAKY_SLOPE * bn)
    return xyz + jnp.transpose(act, (0, 2, 1))


if __name__ == "__main__":
    B, C, N = 2, 3, 16          # n_points = 16, nfeat = 3, k = 4
    key = jax.random.PRNGKey(0)
    kx, kw, kb = jax.random.split(key, 3)

    xyz = jax.random.normal(kx, (B, C, N), dtype=jnp.float32)

    # deterministic parameter init (Linear(3,3) + BatchNorm1d(N) defaults)
    bound = 1.0 / float(jnp.sqrt(3.0))
    w = jax.random.uniform(kw, (3, 3), minval=-bound, maxval=bound,
                           dtype=jnp.float32)
    b = jax.random.uniform(kb, (3,), minval=-bound, maxval=bound,
                           dtype=jnp.float32)
    gamma = jnp.ones((N,), jnp.float32)
    beta = jnp.zeros((N,), jnp.float32)

    out = jax.block_until_ready(geometric_unit_forward(xyz, w, b, gamma, beta))
    assert out.shape == (B, C, N) and out.dtype == jnp.float32

    # 1) validate the fused selection: the kernel's picks must be a true top-4
    #    (value multiset matches lax.top_k) and be emitted nearest-first.
    idx_k = jax.block_until_ready(knn_indices(xyz))
    nd = _ref_negdist(xyz)
    v_k = jnp.take_along_axis(nd, idx_k, axis=-1)                # (B, N, 4)
    v_ref = lax.top_k(nd, K_NEIGHBORS)[0]
    assert jnp.allclose(jnp.sort(v_k, axis=-1), jnp.sort(v_ref, axis=-1),
                        atol=1e-5, rtol=1e-5), "top-4 value set mismatch"
    assert bool(jnp.all(v_k[..., :-1] >= v_k[..., 1:] - 1e-6)), \
        "kernel top-4 not in descending (nearest-first) order"

    # 2) validate the full forward against a pure-JAX reference that uses the
    #    same neighbour indices (identical tie-breaking on both paths).
    ref = _ref_forward_from_idx(xyz, idx_k, w, b, gamma, beta)
    assert jnp.allclose(out, ref, atol=1e-3, rtol=1e-3), \
        float(jnp.max(jnp.abs(out - ref)))

    print("KERNEL_OK")
</pallas_src>

<mosaic_0001>
module attributes {stable_mosaic.version = 11 : i64} {
  func.func @_knn_select_kernel(%arg0: i32, %arg1: i32, %arg2: i32, %arg3: memref<1x16x2xf32, #tpu.memory_space<vmem>>, %arg4: memref<1x2x16xf32, #tpu.memory_space<vmem>>, %arg5: memref<1x16x4xi32, #tpu.memory_space<vmem>>, %arg6: memref<16x4xf32, #tpu.memory_space<vmem>>, %arg7: memref<16x4xi32, #tpu.memory_space<vmem>>) attributes {dimension_semantics = [#tpu.dimension_semantics<parallel>, #tpu.dimension_semantics<parallel>, #tpu.dimension_semantics<arbitrary>], iteration_bounds = array<i64: 2, 1, 1>, scalar_prefetch = 0 : i64, scratch_operands = 2 : i64, tpu.core_type = #tpu.core_type<tc>, window_params = [{transform_indices = @transform_0, window_bounds = array<i64: 1, 16, 2>}, {transform_indices = @transform_1, window_bounds = array<i64: 1, 2, 16>}, {transform_indices = @transform_2, window_bounds = array<i64: 1, 16, 4>}]} {
    %c0_i32 = arith.constant 0 : i32
    %0 = arith.cmpi eq, %arg2, %c0_i32 : i32
    %1 = arith.extui %0 : i1 to i32
    %c0_i32_0 = arith.constant 0 : i32
    %2 = arith.cmpi ne, %1, %c0_i32_0 : i32
    scf.if %2 {
      %cst_58 = arith.constant 0xFF800000 : f32
      %142 = vector.broadcast %cst_58 : f32 to vector<16x4xf32>
      %c0_59 = arith.constant 0 : index
      %c0_60 = arith.constant 0 : index
      %143 = vector.load %arg6[%c0_59, %c0_60] : memref<16x4xf32, #tpu.memory_space<vmem>>, vector<16x4xf32>
      tpu.vector_store %arg6[%c0_59, %c0_60], %142 {strides = array<i32>} : memref<16x4xf32, #tpu.memory_space<vmem>>, vector<16x4xf32>,
      %c0_i32_61 = arith.constant 0 : i32
      %144 = vector.broadcast %c0_i32_61 : i32 to vector<16x4xi32>
      %c0_62 = arith.constant 0 : index
      %c0_63 = arith.constant 0 : index
      %145 = vector.load %arg7[%c0_62, %c0_63] : memref<16x4xi32, #tpu.memory_space<vmem>>, vector<16x4xi32>
      tpu.vector_store %arg7[%c0_62, %c0_63], %144 {strides = array<i32>} : memref<16x4xi32, #tpu.memory_space<vmem>>, vector<16x4xi32>,
    } else {
    }
    %c0 = arith.constant 0 : index
    %c0_1 = arith.constant 0 : index
    %c0_2 = arith.constant 0 : index
    %3 = vector.load %arg3[%c0, %c0_1, %c0_2] : memref<1x16x2xf32, #tpu.memory_space<vmem>>, vector<1x16x1xf32>
    %4 = vector.shape_cast %3 : vector<1x16x1xf32> to vector<16x1xf32>
    %c0_3 = arith.constant 0 : index
    %c0_4 = arith.constant 0 : index
    %c1 = arith.constant 1 : index
    %5 = vector.load %arg3[%c0_3, %c0_4, %c1] : memref<1x16x2xf32, #tpu.memory_space<vmem>>, vector<1x16x1xf32>
    %6 = vector.shape_cast %5 : vector<1x16x1xf32> to vector<16x1xf32>
    %c0_5 = arith.constant 0 : index
    %c0_6 = arith.constant 0 : index
    %c0_7 = arith.constant 0 : index
    %7 = vector.load %arg4[%c0_5, %c0_6, %c0_7] : memref<1x2x16xf32, #tpu.memory_space<vmem>>, vector<1x1x16xf32>
    %8 = vector.shape_cast %7 : vector<1x1x16xf32> to vector<1x16xf32>
    %c0_8 = arith.constant 0 : index
    %c1_9 = arith.constant 1 : index
    %c0_10 = arith.constant 0 : index
    %9 = vector.load %arg4[%c0_8, %c1_9, %c0_10] : memref<1x2x16xf32, #tpu.memory_space<vmem>>, vector<1x1x16xf32>
    %10 = vector.shape_cast %9 : vector<1x1x16xf32> to vector<1x16xf32>
    %11 = vector.broadcast %4 : vector<16x1xf32> to vector<16x16xf32>
    %12 = vector.broadcast %8 : vector<1x16xf32> to vector<16x16xf32>
    %13 = arith.mulf %11, %12 : vector<16x16xf32>
    %14 = vector.broadcast %6 : vector<16x1xf32> to vector<16x16xf32>
    %15 = vector.broadcast %10 : vector<1x16xf32> to vector<16x16xf32>
    %16 = arith.mulf %14, %15 : vector<16x16xf32>
    %17 = arith.addf %13, %16 : vector<16x16xf32>
    %cst = arith.constant 2.000000e+00 : f32
    %18 = vector.broadcast %cst : f32 to vector<16x16xf32>
    %19 = arith.mulf %18, %17 : vector<16x16xf32>
    %20 = arith.mulf %4, %4 : vector<16x1xf32>
    %21 = arith.mulf %6, %6 : vector<16x1xf32>
    %22 = arith.addf %20, %21 : vector<16x1xf32>
    %23 = arith.mulf %8, %8 : vector<1x16xf32>
    %24 = arith.mulf %10, %10 : vector<1x16xf32>
    %25 = arith.addf %23, %24 : vector<1x16xf32>
    %26 = vector.broadcast %22 : vector<16x1xf32> to vector<16x16xf32>
    %27 = arith.subf %26, %19 : vector<16x16xf32>
    %28 = vector.broadcast %25 : vector<1x16xf32> to vector<16x16xf32>
    %29 = arith.addf %27, %28 : vector<16x16xf32>
    %cst_11 = arith.constant 0.000000e+00 : f32
    %30 = vector.broadcast %cst_11 : f32 to vector<16x16xf32>
    %31 = arith.subf %30, %29 : vector<16x16xf32>
    %c16_i32 = arith.constant 16 : i32
    %32 = arith.muli %arg2, %c16_i32 : i32
    %33 = tpu.iota {dimensions = array<i32: 1>} : vector<1x16xi32>
    %34 = vector.broadcast %32 : i32 to vector<1x16xi32>
    %35 = arith.addi %34, %33 : vector<1x16xi32>
    %cst_12 = arith.constant dense<0xFF800000> : vector<16xf32>
    %36 = vector.multi_reduction <maximumf>, %31, %cst_12 [1] : vector<16x16xf32> to vector<16xf32>
    %37 = vector.shape_cast %36 : vector<16xf32> to vector<16x1xf32>
    %38 = vector.broadcast %37 : vector<16x1xf32> to vector<16x16xf32>
    %39 = arith.cmpf oeq, %31, %38 : vector<16x16xf32>
    %c2147483647_i32 = arith.constant 2147483647 : i32
    %40 = vector.shape_cast %35 : vector<1x16xi32> to vector<1x16xi32>
    %41 = vector.broadcast %40 : vector<1x16xi32> to vector<16x16xi32>
    %42 = vector.broadcast %c2147483647_i32 : i32 to vector<16x16xi32>
    %43 = arith.select %39, %41, %42 : vector<16x16xi1>, vector<16x16xi32>
    %cst_13 = arith.constant dense<2147483647> : vector<16xi32>
    %44 = vector.multi_reduction <minsi>, %43, %cst_13 [1] : vector<16x16xi32> to vector<16xi32>
    %45 = vector.shape_cast %44 : vector<16xi32> to vector<16x1xi32>
    %46 = vector.broadcast %35 : vector<1x16xi32> to vector<16x16xi32>
    %47 = vector.broadcast %45 : vector<16x1xi32> to vector<16x16xi32>
    %48 = arith.cmpi eq, %46, %47 : vector<16x16xi32>
    %cst_14 = arith.constant 0xFF800000 : f32
    %49 = vector.broadcast %cst_14 : f32 to vector<16x16xf32>
    %50 = arith.select %48, %49, %31 : vector<16x16xi1>, vector<16x16xf32>
    %cst_15 = arith.constant dense<0xFF800000> : vector<16xf32>
    %51 = vector.multi_reduction <maximumf>, %50, %cst_15 [1] : vector<16x16xf32> to vector<16xf32>
    %52 = vector.shape_cast %51 : vector<16xf32> to vector<16x1xf32>
    %53 = vector.broadcast %52 : vector<16x1xf32> to vector<16x16xf32>
    %54 = arith.cmpf oeq, %50, %53 : vector<16x16xf32>
    %c2147483647_i32_16 = arith.constant 2147483647 : i32
    %55 = vector.shape_cast %35 : vector<1x16xi32> to vector<1x16xi32>
    %56 = vector.broadcast %55 : vector<1x16xi32> to vector<16x16xi32>
    %57 = vector.broadcast %c2147483647_i32_16 : i32 to vector<16x16xi32>
    %58 = arith.select %54, %56, %57 : vector<16x16xi1>, vector<16x16xi32>
    %cst_17 = arith.constant dense<2147483647> : vector<16xi32>
    %59 = vector.multi_reduction <minsi>, %58, %cst_17 [1] : vector<16x16xi32> to vector<16xi32>
    %60 = vector.shape_cast %59 : vector<16xi32> to vector<16x1xi32>
    %61 = vector.broadcast %35 : vector<1x16xi32> to vector<16x16xi32>
    %62 = vector.broadcast %60 : vector<16x1xi32> to vector<16x16xi32>
    %63 = arith.cmpi eq, %61, %62 : vector<16x16xi32>
    %cst_18 = arith.constant 0xFF800000 : f32
    %64 = vector.broadcast %cst_18 : f32 to vector<16x16xf32>
    %65 = arith.select %63, %64, %50 : vector<16x16xi1>, vector<16x16xf32>
    %cst_19 = arith.constant dense<0xFF800000> : vector<16xf32>
    %66 = vector.multi_reduction <maximumf>, %65, %cst_19 [1] : vector<16x16xf32> to vector<16xf32>
    %67 = vector.shape_cast %66 : vector<16xf32> to vector<16x1xf32>
    %68 = vector.broadcast %67 : vector<16x1xf32> to vector<16x16xf32>
    %69 = arith.cmpf oeq, %65, %68 : vector<16x16xf32>
    %c2147483647_i32_20 = arith.constant 2147483647 : i32
    %70 = vector.shape_cast %35 : vector<1x16xi32> to vector<1x16xi32>
    %71 = vector.broadcast %70 : vector<1x16xi32> to vector<16x16xi32>
    %72 = vector.broadcast %c2147483647_i32_20 : i32 to vector<16x16xi32>
    %73 = arith.select %69, %71, %72 : vector<16x16xi1>, vector<16x16xi32>
    %cst_21 = arith.constant dense<2147483647> : vector<16xi32>
    %74 = vector.multi_reduction <minsi>, %73, %cst_21 [1] : vector<16x16xi32> to vector<16xi32>
    %75 = vector.shape_cast %74 : vector<16xi32> to vector<16x1xi32>
    %76 = vector.broadcast %35 : vector<1x16xi32> to vector<16x16xi32>
    %77 = vector.broadcast %75 : vector<16x1xi32> to vector<16x16xi32>
    %78 = arith.cmpi eq, %76, %77 : vector<16x16xi32>
    %cst_22 = arith.constant 0xFF800000 : f32
    %79 = vector.broadcast %cst_22 : f32 to vector<16x16xf32>
    %80 = arith.select %78, %79, %65 : vector<16x16xi1>, vector<16x16xf32>
    %cst_23 = arith.constant dense<0xFF800000> : vector<16xf32>
    %81 = vector.multi_reduction <maximumf>, %80, %cst_23 [1] : vector<16x16xf32> to vector<16xf32>
    %82 = vector.shape_cast %81 : vector<16xf32> to vector<16x1xf32>
    %83 = vector.broadcast %82 : vector<16x1xf32> to vector<16x16xf32>
    %84 = arith.cmpf oeq, %80, %83 : vector<16x16xf32>
    %c2147483647_i32_24 = arith.constant 2147483647 : i32
    %85 = vector.shape_cast %35 : vector<1x16xi32> to vector<1x16xi32>
    %86 = vector.broadcast %85 : vector<1x16xi32> to vector<16x16xi32>
    %87 = vector.broadcast %c2147483647_i32_24 : i32 to vector<16x16xi32>
    %88 = arith.select %84, %86, %87 : vector<16x16xi1>, vector<16x16xi32>
    %cst_25 = arith.constant dense<2147483647> : vector<16xi32>
    %89 = vector.multi_reduction <minsi>, %88, %cst_25 [1] : vector<16x16xi32> to vector<16xi32>
    %90 = vector.shape_cast %89 : vector<16xi32> to vector<16x1xi32>
    %c0_26 = arith.constant 0 : index
    %c0_27 = arith.constant 0 : index
    %91 = vector.load %arg6[%c0_26, %c0_27] : memref<16x4xf32, #tpu.memory_space<vmem>>, vector<16x1xf32>
    %c0_28 = arith.constant 0 : index
    %c1_29 = arith.constant 1 : index
    %92 = vector.load %arg6[%c0_28, %c1_29] : memref<16x4xf32, #tpu.memory_space<vmem>>, vector<16x1xf32>
    %c0_30 = arith.constant 0 : index
    %c2 = arith.constant 2 : index
    %93 = vector.load %arg6[%c0_30, %c2] : memref<16x4xf32, #tpu.memory_space<vmem>>, vector<16x1xf32>
    %c0_31 = arith.constant 0 : index
    %c3 = arith.constant 3 : index
    %94 = vector.load %arg6[%c0_31, %c3] : memref<16x4xf32, #tpu.memory_space<vmem>>, vector<16x1xf32>
    %c0_32 = arith.constant 0 : index
    %c0_33 = arith.constant 0 : index
    %95 = vector.load %arg7[%c0_32, %c0_33] : memref<16x4xi32, #tpu.memory_space<vmem>>, vector<16x1xi32>
    %c0_34 = arith.constant 0 : index
    %c1_35 = arith.constant 1 : index
    %96 = vector.load %arg7[%c0_34, %c1_35] : memref<16x4xi32, #tpu.memory_space<vmem>>, vector<16x1xi32>
    %c0_36 = arith.constant 0 : index
    %c2_37 = arith.constant 2 : index
    %97 = vector.load %arg7[%c0_36, %c2_37] : memref<16x4xi32, #tpu.memory_space<vmem>>, vector<16x1xi32>
    %c0_38 = arith.constant 0 : index
    %c3_39 = arith.constant 3 : index
    %98 = vector.load %arg7[%c0_38, %c3_39] : memref<16x4xi32, #tpu.memory_space<vmem>>, vector<16x1xi32>
    %99 = arith.cmpf oge, %91, %82 : vector<16x1xf32>
    %100 = arith.select %99, %91, %82 : vector<16x1xi1>, vector<16x1xf32>
    %101 = arith.select %99, %95, %90 : vector<16x1xi1>, vector<16x1xi32>
    %102 = arith.cmpf oge, %92, %67 : vector<16x1xf32>
    %103 = arith.select %102, %92, %67 : vector<16x1xi1>, vector<16x1xf32>
    %104 = arith.select %102, %96, %75 : vector<16x1xi1>, vector<16x1xi32>
    %105 = arith.cmpf oge, %93, %52 : vector<16x1xf32>
    %106 = arith.select %105, %93, %52 : vector<16x1xi1>, vector<16x1xf32>
    %107 = arith.select %105, %97, %60 : vector<16x1xi1>, vector<16x1xi32>
    %108 = arith.cmpf oge, %94, %37 : vector<16x1xf32>
    %109 = arith.select %108, %94, %37 : vector<16x1xi1>, vector<16x1xf32>
    %110 = arith.select %108, %98, %45 : vector<16x1xi1>, vector<16x1xi32>
    %111 = arith.cmpf oge, %100, %106 : vector<16x1xf32>
    %112 = arith.select %111, %100, %106 : vector<16x1xi1>, vector<16x1xf32>
    %113 = arith.select %111, %106, %100 : vector<16x1xi1>, vector<16x1xf32>
    %114 = arith.select %111, %101, %107 : vector<16x1xi1>, vector<16x1xi32>
    %115 = arith.select %111, %107, %101 : vector<16x1xi1>, vector<16x1xi32>
    %116 = arith.cmpf oge, %103, %109 : vector<16x1xf32>
    %117 = arith.select %116, %103, %109 : vector<16x1xi1>, vector<16x1xf32>
    %118 = arith.select %116, %109, %103 : vector<16x1xi1>, vector<16x1xf32>
    %119 = arith.select %116, %104, %110 : vector<16x1xi1>, vector<16x1xi32>
    %120 = arith.select %116, %110, %104 : vector<16x1xi1>, vector<16x1xi32>
    %121 = arith.cmpf oge, %112, %117 : vector<16x1xf32>
    %122 = arith.select %121, %112, %117 : vector<16x1xi1>, vector<16x1xf32>
    %123 = arith.select %121, %117, %112 : vector<16x1xi1>, vector<16x1xf32>
    %124 = arith.select %121, %114, %119 : vector<16x1xi1>, vector<16x1xi32>
    %125 = arith.select %121, %119, %114 : vector<16x1xi1>, vector<16x1xi32>
    %126 = arith.cmpf oge, %113, %118 : vector<16x1xf32>
    %127 = arith.select %126, %113, %118 : vector<16x1xi1>, vector<16x1xf32>
    %128 = arith.select %126, %118, %113 : vector<16x1xi1>, vector<16x1xf32>
    %129 = arith.select %126, %115, %120 : vector<16x1xi1>, vector<16x1xi32>
    %130 = arith.select %126, %120, %115 : vector<16x1xi1>, vector<16x1xi32>
    %c0_40 = arith.constant 0 : index
    %c0_41 = arith.constant 0 : index
    %131 = vector.load %arg6[%c0_40, %c0_41] : memref<16x4xf32, #tpu.memory_space<vmem>>, vector<16x1xf32>
    tpu.vector_store %arg6[%c0_40, %c0_41], %122 {strides = array<i32>} : memref<16x4xf32, #tpu.memory_space<vmem>>, vector<16x1xf32>,
    %c0_42 = arith.constant 0 : index
    %c0_43 = arith.constant 0 : index
    %132 = vector.load %arg7[%c0_42, %c0_43] : memref<16x4xi32, #tpu.memory_space<vmem>>, vector<16x1xi32>
    tpu.vector_store %arg7[%c0_42, %c0_43], %124 {strides = array<i32>} : memref<16x4xi32, #tpu.memory_space<vmem>>, vector<16x1xi32>,
    %c0_44 = arith.constant 0 : index
    %c1_45 = arith.constant 1 : index
    %133 = vector.load %arg6[%c0_44, %c1_45] : memref<16x4xf32, #tpu.memory_space<vmem>>, vector<16x1xf32>
    tpu.vector_store %arg6[%c0_44, %c1_45], %123 {strides = array<i32>} : memref<16x4xf32, #tpu.memory_space<vmem>>, vector<16x1xf32>,
    %c0_46 = arith.constant 0 : index
    %c1_47 = arith.constant 1 : index
    %134 = vector.load %arg7[%c0_46, %c1_47] : memref<16x4xi32, #tpu.memory_space<vmem>>, vector<16x1xi32>
    tpu.vector_store %arg7[%c0_46, %c1_47], %125 {strides = array<i32>} : memref<16x4xi32, #tpu.memory_space<vmem>>, vector<16x1xi32>,
    %c0_48 = arith.constant 0 : index
    %c2_49 = arith.constant 2 : index
    %135 = vector.load %arg6[%c0_48, %c2_49] : memref<16x4xf32, #tpu.memory_space<vmem>>, vector<16x1xf32>
    tpu.vector_store %arg6[%c0_48, %c2_49], %127 {strides = array<i32>} : memref<16x4xf32, #tpu.memory_space<vmem>>, vector<16x1xf32>,
    %c0_50 = arith.constant 0 : index
    %c2_51 = arith.constant 2 : index
    %136 = vector.load %arg7[%c0_50, %c2_51] : memref<16x4xi32, #tpu.memory_space<vmem>>, vector<16x1xi32>
    tpu.vector_store %arg7[%c0_50, %c2_51], %129 {strides = array<i32>} : memref<16x4xi32, #tpu.memory_space<vmem>>, vector<16x1xi32>,
    %c0_52 = arith.constant 0 : index
    %c3_53 = arith.constant 3 : index
    %137 = vector.load %arg6[%c0_52, %c3_53] : memref<16x4xf32, #tpu.memory_space<vmem>>, vector<16x1xf32>
    tpu.vector_store %arg6[%c0_52, %c3_53], %128 {strides = array<i32>} : memref<16x4xf32, #tpu.memory_space<vmem>>, vector<16x1xf32>,
    %c0_54 = arith.constant 0 : index
    %c3_55 = arith.constant 3 : index
    %138 = vector.load %arg7[%c0_54, %c3_55] : memref<16x4xi32, #tpu.memory_space<vmem>>, vector<16x1xi32>
    tpu.vector_store %arg7[%c0_54, %c3_55], %130 {strides = array<i32>} : memref<16x4xi32, #tpu.memory_space<vmem>>, vector<16x1xi32>,
    %c0_i32_56 = arith.constant 0 : i32
    %139 = arith.cmpi eq, %arg2, %c0_i32_56 : i32
    %140 = arith.extui %139 : i1 to i32
    %c0_i32_57 = arith.constant 0 : i32
    %141 = arith.cmpi ne, %140, %c0_i32_57 : i32
    scf.if %141 {
      %c0_58 = arith.constant 0 : index
      %c0_59 = arith.constant 0 : index
      %142 = vector.load %arg7[%c0_58, %c0_59] : memref<16x4xi32, #tpu.memory_space<vmem>>, vector<16x4xi32>
      %c0_60 = arith.constant 0 : index
      %c0_61 = arith.constant 0 : index
      %c0_62 = arith.constant 0 : index
      %143 = vector.load %arg5[%c0_60, %c0_61, %c0_62] : memref<1x16x4xi32, #tpu.memory_space<vmem>>, vector<1x16x4xi32>
      %144 = vector.shape_cast %143 : vector<1x16x4xi32> to vector<16x4xi32>
      %145 = vector.shape_cast %142 : vector<16x4xi32> to vector<1x16x4xi32>
      tpu.vector_store %arg5[%c0_60, %c0_61, %c0_62], %145 {strides = array<i32>} : memref<1x16x4xi32, #tpu.memory_space<vmem>>, vector<1x16x4xi32>,
    } else {
    }
    return
  }
  func.func @transform_0(%arg0: i32, %arg1: i32, %arg2: i32) -> (i32, i32, i32) {
    %c0_i32 = arith.constant 0 : i32
    %c0_i32_0 = arith.constant 0 : i32
    return %arg0, %arg1, %c0_i32 : i32, i32, i32
  }
  func.func @transform_1(%arg0: i32, %arg1: i32, %arg2: i32) -> (i32, i32, i32) {
    %c0_i32 = arith.constant 0 : i32
    %c0_i32_0 = arith.constant 0 : i32
    return %arg0, %c0_i32, %arg2 : i32, i32, i32
  }
  func.func @transform_2(%arg0: i32, %arg1: i32, %arg2: i32) -> (i32, i32, i32) {
    %c0_i32 = arith.constant 0 : i32
    %c0_i32_0 = arith.constant 0 : i32
    return %arg0, %arg1, %c0_i32 : i32, i32, i32
  }
}

module attributes {stable_mosaic.version = 11 : i64} {
  func.func @_geo_unit_kernel(%arg0: i32, %arg1: memref<6x16xf32, #tpu.memory_space<vmem>>, %arg2: memref<6x16xf32, #tpu.memory_space<vmem>>, %arg3: memref<6x6xf32, #tpu.memory_space<vmem>>, %arg4: memref<6x1xf32, #tpu.memory_space<vmem>>, %arg5: memref<1x16xf32, #tpu.memory_space<vmem>>, %arg6: memref<1x16xf32, #tpu.memory_space<vmem>>, %arg7: memref<6x16xf32, #tpu.memory_space<vmem>>) attributes {dimension_semantics = [#tpu.dimension_semantics<parallel>], iteration_bounds = array<i64: 1>, scalar_prefetch = 0 : i64, scratch_operands = 0 : i64, tpu.core_type = #tpu.core_type<tc>, window_params = [{transform_indices = @transform_0, window_bounds = array<i64: 6, 16>}, {transform_indices = @transform_1, window_bounds = array<i64: 6, 16>}, {pipeline_mode = #tpu.pipeline_mode<synchronous>, transform_indices = @transform_2, window_bounds = array<i64: 6, 6>}, {pipeline_mode = #tpu.pipeline_mode<synchronous>, transform_indices = @transform_3, window_bounds = array<i64: 6, 1>}, {transform_indices = @transform_4, window_bounds = array<i64: 1, 16>}, {transform_indices = @transform_5, window_bounds = array<i64: 1, 16>}, {transform_indices = @transform_6, window_bounds = array<i64: 6, 16>}]} {
    %c0 = arith.constant 0 : index
    %c0_0 = arith.constant 0 : index
    %0 = vector.load %arg1[%c0, %c0_0] : memref<6x16xf32, #tpu.memory_space<vmem>>, vector<6x16xf32>
    %c0_1 = arith.constant 0 : index
    %c0_2 = arith.constant 0 : index
    %1 = vector.load %arg2[%c0_1, %c0_2] : memref<6x16xf32, #tpu.memory_space<vmem>>, vector<6x16xf32>
    %2 = arith.subf %0, %1 : vector<6x16xf32>
    %c0_3 = arith.constant 0 : index
    %c0_4 = arith.constant 0 : index
    %3 = vector.load %arg3[%c0_3, %c0_4] : memref<6x6xf32, #tpu.memory_space<vmem>>, vector<6x1xf32>
    %4 = vector.extract_strided_slice %2 {offsets = [0, 0], sizes = [1, 16], strides = [1, 1]} : vector<6x16xf32> to vector<1x16xf32>
    %5 = vector.broadcast %3 : vector<6x1xf32> to vector<6x16xf32>
    %6 = vector.broadcast %4 : vector<1x16xf32> to vector<6x16xf32>
    %7 = arith.mulf %5, %6 : vector<6x16xf32>
    %c0_5 = arith.constant 0 : index
    %c1 = arith.constant 1 : index
    %8 = vector.load %arg3[%c0_5, %c1] : memref<6x6xf32, #tpu.memory_space<vmem>>, vector<6x1xf32>
    %9 = vector.extract_strided_slice %2 {offsets = [1, 0], sizes = [1, 16], strides = [1, 1]} : vector<6x16xf32> to vector<1x16xf32>
    %10 = vector.broadcast %8 : vector<6x1xf32> to vector<6x16xf32>
    %11 = vector.broadcast %9 : vector<1x16xf32> to vector<6x16xf32>
    %12 = arith.mulf %10, %11 : vector<6x16xf32>
    %13 = arith.addf %7, %12 : vector<6x16xf32>
    %c0_6 = arith.constant 0 : index
    %c2 = arith.constant 2 : index
    %14 = vector.load %arg3[%c0_6, %c2] : memref<6x6xf32, #tpu.memory_space<vmem>>, vector<6x1xf32>
    %15 = vector.extract_strided_slice %2 {offsets = [2, 0], sizes = [1, 16], strides = [1, 1]} : vector<6x16xf32> to vector<1x16xf32>
    %16 = vector.broadcast %14 : vector<6x1xf32> to vector<6x16xf32>
    %17 = vector.broadcast %15 : vector<1x16xf32> to vector<6x16xf32>
    %18 = arith.mulf %16, %17 : vector<6x16xf32>
    %19 = arith.addf %13, %18 : vector<6x16xf32>
    %c0_7 = arith.constant 0 : index
    %c3 = arith.constant 3 : index
    %20 = vector.load %arg3[%c0_7, %c3] : memref<6x6xf32, #tpu.memory_space<vmem>>, vector<6x1xf32>
    %21 = vector.extract_strided_slice %2 {offsets = [3, 0], sizes = [1, 16], strides = [1, 1]} : vector<6x16xf32> to vector<1x16xf32>
    %22 = vector.broadcast %20 : vector<6x1xf32> to vector<6x16xf32>
    %23 = vector.broadcast %21 : vector<1x16xf32> to vector<6x16xf32>
    %24 = arith.mulf %22, %23 : vector<6x16xf32>
    %25 = arith.addf %19, %24 : vector<6x16xf32>
    %c0_8 = arith.constant 0 : index
    %c4 = arith.constant 4 : index
    %26 = vector.load %arg3[%c0_8, %c4] : memref<6x6xf32, #tpu.memory_space<vmem>>, vector<6x1xf32>
    %27 = vector.extract_strided_slice %2 {offsets = [4, 0], sizes = [1, 16], strides = [1, 1]} : vector<6x16xf32> to vector<1x16xf32>
    %28 = vector.broadcast %26 : vector<6x1xf32> to vector<6x16xf32>
    %29 = vector.broadcast %27 : vector<1x16xf32> to vector<6x16xf32>
    %30 = arith.mulf %28, %29 : vector<6x16xf32>
    %31 = arith.addf %25, %30 : vector<6x16xf32>
    %c0_9 = arith.constant 0 : index
    %c5 = arith.constant 5 : index
    %32 = vector.load %arg3[%c0_9, %c5] : memref<6x6xf32, #tpu.memory_space<vmem>>, vector<6x1xf32>
    %33 = vector.extract_strided_slice %2 {offsets = [5, 0], sizes = [1, 16], strides = [1, 1]} : vector<6x16xf32> to vector<1x16xf32>
    %34 = vector.broadcast %32 : vector<6x1xf32> to vector<6x16xf32>
    %35 = vector.broadcast %33 : vector<1x16xf32> to vector<6x16xf32>
    %36 = arith.mulf %34, %35 : vector<6x16xf32>
    %37 = arith.addf %31, %36 : vector<6x16xf32>
    %c0_10 = arith.constant 0 : index
    %c0_11 = arith.constant 0 : index
    %38 = vector.load %arg4[%c0_10, %c0_11] : memref<6x1xf32, #tpu.memory_space<vmem>>, vector<6x1xf32>
    %39 = vector.broadcast %38 : vector<6x1xf32> to vector<6x16xf32>
    %40 = arith.addf %37, %39 : vector<6x16xf32>
    %cst = arith.constant dense<0.000000e+00> : vector<16xf32>
    %41 = vector.multi_reduction <add>, %40, %cst [0] : vector<6x16xf32> to vector<16xf32>
    %42 = vector.shape_cast %41 : vector<16xf32> to vector<1x16xf32>
    %cst_12 = arith.constant 0.166666672 : f32
    %43 = vector.broadcast %cst_12 : f32 to vector<1x16xf32>
    %44 = arith.mulf %42, %43 : vector<1x16xf32>
    %45 = vector.broadcast %44 : vector<1x16xf32> to vector<6x16xf32>
    %46 = arith.subf %40, %45 : vector<6x16xf32>
    %47 = arith.mulf %46, %46 : vector<6x16xf32>
    %cst_13 = arith.constant dense<0.000000e+00> : vector<16xf32>
    %48 = vector.multi_reduction <add>, %47, %cst_13 [0] : vector<6x16xf32> to vector<16xf32>
    %49 = vector.shape_cast %48 : vector<16xf32> to vector<1x16xf32>
    %cst_14 = arith.constant 0.166666672 : f32
    %50 = vector.broadcast %cst_14 : f32 to vector<1x16xf32>
    %51 = arith.mulf %49, %50 : vector<1x16xf32>
    %cst_15 = arith.constant 9.99999974E-6 : f32
    %52 = vector.broadcast %cst_15 : f32 to vector<1x16xf32>
    %53 = arith.addf %51, %52 : vector<1x16xf32>
    %54 = math.rsqrt %53 : vector<1x16xf32>
    %c0_16 = arith.constant 0 : index
    %c0_17 = arith.constant 0 : index
    %55 = vector.load %arg5[%c0_16, %c0_17] : memref<1x16xf32, #tpu.memory_space<vmem>>, vector<1x16xf32>
    %56 = arith.mulf %54, %55 : vector<1x16xf32>
    %57 = vector.broadcast %56 : vector<1x16xf32> to vector<6x16xf32>
    %58 = arith.mulf %46, %57 : vector<6x16xf32>
    %c0_18 = arith.constant 0 : index
    %c0_19 = arith.constant 0 : index
    %59 = vector.load %arg6[%c0_18, %c0_19] : memref<1x16xf32, #tpu.memory_space<vmem>>, vector<1x16xf32>
    %60 = vector.broadcast %59 : vector<1x16xf32> to vector<6x16xf32>
    %61 = arith.addf %58, %60 : vector<6x16xf32>
    %cst_20 = arith.constant 0.000000e+00 : f32
    %62 = vector.broadcast %cst_20 : f32 to vector<6x16xf32>
    %63 = arith.cmpf oge, %61, %62 : vector<6x16xf32>
    %cst_21 = arith.constant 1.000000e-01 : f32
    %64 = vector.broadcast %cst_21 : f32 to vector<6x16xf32>
    %65 = arith.mulf %64, %61 : vector<6x16xf32>
    %66 = arith.select %63, %61, %65 : vector<6x16xi1>, vector<6x16xf32>
    %67 = arith.addf %0, %66 : vector<6x16xf32>
    %c0_22 = arith.constant 0 : index
    %c0_23 = arith.constant 0 : index
    %68 = vector.load %arg7[%c0_22, %c0_23] : memref<6x16xf32, #tpu.memory_space<vmem>>, vector<6x16xf32>
    tpu.vector_store %arg7[%c0_22, %c0_23], %67 {strides = array<i32>} : memref<6x16xf32, #tpu.memory_space<vmem>>, vector<6x16xf32>,
    return
  }
  func.func @transform_0(%arg0: i32) -> (i32, i32) {
    %c0_i32 = arith.constant 0 : i32
    %c0_i32_0 = arith.constant 0 : i32
    return %c0_i32, %arg0 : i32, i32
  }
  func.func @transform_1(%arg0: i32) -> (i32, i32) {
    %c0_i32 = arith.constant 0 : i32
    %c0_i32_0 = arith.constant 0 : i32
    return %c0_i32, %arg0 : i32, i32
  }
  func.func @transform_2(%arg0: i32) -> (i32, i32) {
    %c0_i32 = arith.constant 0 : i32
    %c0_i32_0 = arith.constant 0 : i32
    %c0_i32_1 = arith.constant 0 : i32
    return %c0_i32, %c0_i32_0 : i32, i32
  }
  func.func @transform_3(%arg0: i32) -> (i32, i32) {
    %c0_i32 = arith.constant 0 : i32
    %c0_i32_0 = arith.constant 0 : i32
    %c0_i32_1 = arith.constant 0 : i32
    return %c0_i32, %c0_i32_0 : i32, i32
  }
  func.func @transform_4(%arg0: i32) -> (i32, i32) {
    %c0_i32 = arith.constant 0 : i32
    %c0_i32_0 = arith.constant 0 : i32
    return %c0_i32, %arg0 : i32, i32
  }
  func.func @transform_5(%arg0: i32) -> (i32, i32) {
    %c0_i32 = arith.constant 0 : i32
    %c0_i32_0 = arith.constant 0 : i32
    return %c0_i32, %arg0 : i32, i32
  }
  func.func @transform_6(%arg0: i32) -> (i32, i32) {
    %c0_i32 = arith.constant 0 : i32
    %c0_i32_0 = arith.constant 0 : i32
    return %c0_i32, %arg0 : i32, i32
  }
}

</mosaic_0001>

<bundles_post_ra>
// kernel: geometric_unit_forward.2
= control target key start
LH: loop header
LB: loop body
LE: loop exit
PB: predicated region body
PF: predicated region fallthrough
CT: control target
= control target key end

     0   :  { %7 = vsyncpa [#allocation5], 0  ;;  %s1527_s0 = inlined_call_operand.hbm [shape: f32[2,16,2], index: 0, kind: input, shape index: {}]   ;;  %s1528_s1 = inlined_call_operand.hbm [shape: f32[2,2,16], index: 1, kind: input, shape index: {}]   ;;  %s1529_s2 = inlined_call_operand.hbm [shape: s32[2,16,4], index: 2, kind: output, shape index: {}]  }
   0x1   :  { %9 = vsyncpa [#allocation5 + $0x1], 0 }
   0x2   :  { %10 = vsyncpa [#allocation8], 0 }
   0x3   :  { %12 = vsyncpa [#allocation8 + $0x1], 0 }
   0x4   :  { %13 = vsyncpa [#allocation6], 0 }
   0x5   :  { %15 = vsyncpa [#allocation6 + $0x1], 0  ;;  %s1081_s9 = smov 0   ;;  %s1083_s10 = smov 0  }
   0x6   :  { %s1085_s11 = smov 0   ;;  %s1087_s12 = smov 0  }
   0x7   :  { %s1089_s13 = smov 0   ;;  %s1091_s14 = smov 0  }
   0x8 LB: > { %s799_s15 = sadd.s32 4294967295, %s1049_s14   ;;  %s800_s16 = sadd.s32 4294967294, %s1049_s14   ;;  %s1049_s14 = sphi %s1091_s14, %s21_s14   ;;  %s1045_s13 = sphi %s1089_s13, %s1548_s13   ;;  %s1041_s12 = sphi %s1087_s12, %s1547_s12   ;;  %s1037_s11 = sphi %s1085_s11, %s1546_s11   ;;  %s1033_s10 = sphi %s1083_s10, %s1545_s10   ;;  %s1029_s9 = sphi %s1081_s9, %s1544_s9  }
   0x9   : > { %s40_s17 = sadd.s32 1, %s1045_s13  ;;  %s49_s18 = sadd.s32 1, %s1037_s11 }
   0xa   : > { %p42_p0 = scmp.ge.s32.totalorder %s40_s17, 2  ;;  %p56_p1 = scmp.ne.s32.totalorder %s1037_s11, %s1033_s10 }
   0xb   : > { %p57_p2 = scmp.eq.s32.totalorder %s1049_s14, 0  ;;  %p62_p3 = scmp.ne.s32.totalorder %s1033_s10, %s1029_s9 }
   0xc   : > { %s1550_s17 = smov (%p42_p0, %s40_s17), 0  ;;  %p63_p5 = scmp.eq.s32.totalorder %s799_s15, 0 }
   0xd   : > { %p1122_p4 = por %p57_p2, %p56_p1  ;;  %s44_s20 = ssub.s32 %s1045_s13, %s1550_s17 }
   0xe   : > { %p116_p6 = scmp.eq.s32.totalorder %s799_s15, 1  ;;  %p47_p7 = scmp.eq.s32.totalorder %s44_s20, 0 }
   0xf   : > { %p1128_p8 = por %p63_p5, %p62_p3  ;;  %p122_p10 = scmp.eq.s32.totalorder %s800_s16, 1 }
  0x10   : > { %p1132_p9 = por %p116_p6, %p56_p1  ;;  %p836_p13 = scmp.lt.s32.totalorder %s1049_s14, 2 }
  0x11   : > { %s1533_s21 = scalar_select %p1128_p8, 1, 0 }
  0x12   : > { %s1534_s22 = scalar_select %p1132_p9, 1, 0 }
  0x13   : > { %s1137_s23 = scalar_select %p47_p7, %s1037_s11, %s49_s18  }
  0x14   : > { %p1139_p11 = por %p122_p10, %p62_p3  ;;  %s1146_s25 = sand.u32 1, %s1037_s11  }
  0x15   : > { %s803_s26 = sshll.u32 %s1146_s25, 4  ;;  %s817_s27 = sshll.u32 %s1045_s13, 8 }
  0x16   : > { %s1535_s24 = scalar_select %p1139_p11, 1, 0 }
  0x17   : > { %s1153_s30 = scalar_lea.hbm %s1527_s0, %s817_s27  ;;  %s146_s3 = scalar_lea.vmem [#allocation4], %s803_s26 }
  0x18   : > { %s155_s4 = sshll.u32 %s146_s3, 4  ;;  %p1159_p0 = pnand %p836_p13, %p1122_p4  ;;  %s1155_s4 = int_to_ptr.vmem [resolvable:$true] %s155_s4 }
  0x19   : > { %s143_s6 = scalar_lea.sflag [#allocation5], %s1146_s25  ;;  %s903_s7 = scalar_lea.hbm %s1153_s30, 256 }
  0x1a   : > { %p904_p2 = scmp.ne.s32.totalorder %s1153_s30, %s903_s7  ;;  %p905_p3 = pneg %p1159_p0 }
  0x1b   : > { %s908_s16 = scalar_lea.hbm %s1527_s0, 512  ;;  %p909_p4 = scmp.lt.u32.totalorder %s1153_s30, %s1527_s0 }
  0x1c   : > { %p906_p5 = pnand %p905_p3, %p904_p2  ;;  %p910_p7 = scmp.lt.u32.totalorder %s908_s16, %s903_s7 }
  0x1d   : > { %p912_p13 = scmp.lt.u32.totalorder %s903_s7, %s1153_s30 }
  0x1e   : > { %p907_p6 = pneg %p906_p5  ;;  %p911_p10 = por %p910_p7, %p909_p4 }
  0x20   : > { %p913_p12 = por %p912_p13, %p911_p10 }
  0x22   : > { %p914_p1 = pnand %p913_p12, %p907_p6 }
  0x24   : > { %917 = shalt.err (!%p914_p1)
}
  0x25   : > { %s918_s20 = scalar_lea.vmem %s1155_s4, 256  ;;  %s1051_s26 = smov [#allocation4]  }
  0x26   : > { %p919_p2 = scmp.ne.s32.totalorder %s1155_s4, %s918_s20  ;;  %s923_s27 = sshll.u32 %s1051_s26, 4  ;;  %s924_s27 = int_to_ptr.vmem [resolvable:$false] %s923_s27 }
  0x27   : > { %s925_s28 = scalar_lea.vmem %s924_s27, 512  ;;  %p926_p9 = scmp.lt.s32.totalorder %s1155_s4, %s924_s27 }
  0x28   : > { %p921_p5 = pnand %p919_p2, %p905_p3  ;;  %p927_p4 = scmp.lt.s32.totalorder %s925_s28, %s918_s20 }
  0x2a   : > { %p922_p11 = pneg %p921_p5  ;;  %p928_p7 = por %p927_p4, %p926_p9 }
  0x2c   : > { %p929_p10 = pnand %p928_p7, %p922_p11 }
  0x2e   : > { %932 = shalt.err (!%p929_p10)
}
  0x2f   : > { %s1052_s29 = smov 128   ;;  %s1053_s3 = smov 8  }
  0x30   : > { %828 = dma.hbm_to_vmem [thread:$0]  (!%p1159_p0), %s1153_s30, 256, %s1155_s4, %s143_s6, %s1052_s29, %s1052_s29, %s1053_s3  }
  0x31   : > { %p182_p12 = scmp.lt.s32.totalorder %s1049_s14, 3  ;;  %s806_s7 = sshll.u32 %s1146_s25, 1 }
  0x32   : > { %s807_s8 = sshll.u32 %s1045_s13, 5  ;;  %p1537_p9 = scmp.ge.s32.totalorder %s1049_s14, 1 }
  0x33   : > { %s1204_s19 = scalar_lea.hbm %s1528_s1, %s807_s8  ;;  %s169_s20 = scalar_lea.vmem [#allocation7], %s806_s7 }
  0x34   : > { %p1197_p11 = pnand %p1537_p9, %p182_p12  ;;  %s177_s26 = sshll.u32 %s169_s20, 4  ;;  %s178_s26 = int_to_ptr.vmem [resolvable:$true] %s177_s26 }
  0x35   : > { %s166_s30 = scalar_lea.sflag [#allocation8], %s1146_s25  ;;  %s933_s4 = scalar_lea.hbm %s1204_s19, 32 }
  0x36   : > { %s1538_s15 = scalar_select %p1197_p11, 1, 0 }
  0x37   : > { %p934_p1 = scmp.ne.s32.totalorder %s1204_s19, %s933_s4  ;;  %s938_s28 = scalar_lea.hbm %s1528_s1, 64 }
  0x38   : > { %p939_p2 = scmp.lt.u32.totalorder %s1204_s19, %s1528_s1  ;;  %p940_p5 = scmp.lt.u32.totalorder %s938_s28, %s933_s4 }
  0x39   : > { %p936_p6 = pnand %p934_p1, %p905_p3  ;;  %p942_p7 = scmp.lt.u32.totalorder %s933_s4, %s1204_s19 }
  0x3a   : > { %p941_p4 = por %p940_p5, %p939_p2 }
  0x3b   : > { %p937_p13 = pneg %p936_p6 }
  0x3c   : > { %p943_p10 = por %p942_p7, %p941_p4 }
  0x3e   : > { %p944_p12 = pnand %p943_p10, %p937_p13 }
  0x40   : > { %947 = shalt.err (!%p944_p12)
}
  0x41   : > { %s948_s25 = scalar_lea.vmem %s178_s26, 32  ;;  %s1054_s7 = smov [#allocation7]  }
  0x42   : > { %p949_p9 = scmp.ne.s32.totalorder %s178_s26, %s948_s25  ;;  %s953_s8 = sshll.u32 %s1054_s7, 4  ;;  %s954_s8 = int_to_ptr.vmem [resolvable:$false] %s953_s8 }
  0x43   : > { %s955_s16 = scalar_lea.vmem %s954_s8, 64  ;;  %p956_p8 = scmp.lt.s32.totalorder %s178_s26, %s954_s8 }
  0x44   : > { %p951_p1 = pnand %p949_p9, %p905_p3  ;;  %p957_p11 = scmp.lt.s32.totalorder %s955_s16, %s948_s25 }
  0x46   : > { %p952_p6 = pneg %p951_p1  ;;  %p958_p2 = por %p957_p11, %p956_p8 }
  0x48   : > { %p959_p5 = pnand %p958_p2, %p952_p6 }
  0x4a   : > { %962 = shalt.err (!%p959_p5)
}
  0x4b   : > { %831 = dma.hbm_to_vmem [thread:$0]  (!%p1159_p0), %s1204_s19, 32, %s178_s26, %s166_s30  }
  0x4c   : > { %p1539_p13 = scmp.ne.s32.totalorder %s1538_s15, 0 }
  0x4d   : > { %s1229_s18 = sand.u32 (!%p1539_p13), 1, %s1033_s10   ;;  %p1540_p8 = scmp.ne.s32.totalorder (!%p1539_p13), %s1533_s21, 0 }
  0x4e   : > { %186 = sbr.rel (%p1539_p13) target bundleno = 2264 (0x8d8), region = 28  ;;  %s809_s20 = sshll.u32 (!%p1539_p13), %s1229_s18, 4 }
  0x4f   : > { %s189_s4 = scalar_lea.sflag (!%p1539_p13), [#allocation5], %s1229_s18  ;;  %s192_s6 = scalar_lea.vmem (!%p1539_p13), [#allocation4], %s809_s20 }
  0x55   : > { %1016 = dma.done.wait (%p1540_p8), %s189_s4, 256  }
  0x56   : > { %1018 = vsyncadd (%p1540_p8), %s189_s4, 4294967040  ;;  %s810_s5 = sshll.u32 %s1229_s18, 1  ;;  %s198_s15 = scalar_lea.sflag [#allocation8], %s1229_s18 }
  0x57   : > { %s1241_s19 = scalar_lea.vmem [#allocation7], %s810_s5 }
  0x58   : > { %1020 = dma.done.wait (%p1540_p8), %s198_s15, 32  }
  0x59   : > { %1022 = vsyncadd (%p1540_p8), %s198_s15, 4294967264  ;;  %vm233_vm0 = vcmask 31744   ;;  %v1055_v0 = vmov 0   ;;  %v1056_v1 = vmov -inf   ;;  %v1057_v2 = vmov 1   ;;  %v238_v3 = vld [vmem:[%s192_s6] sm:$0xff] }
  0x5a   : > { %898 = vset.pattern.permute.xlu1 %v1055_v0  ;;  %234 = vst.msk [vmem:[#allocation2] sm:$0xff] %vm233_vm0, %v1056_v1  ;;  %235 = vst.msk [vmem:[#allocation2 + $0x8] sm:$0xff] %vm233_vm0, %v1056_v1  ;;  %899 = vset.pattern.permute.xlu0 %v1057_v2  ;;  %v239_v4 = vld [vmem:[%s192_s6 + $0x8] sm:$0xff]  ;;  %v276_v5 = vmul.f32 %v238_v3, %v238_v3  ;;  %s1058_s21 = smov 127   ;;  %v252_v11 = vlaneseq  ;;  %v240_v15 = vld [vmem:[%s1241_s19] sm:$0x1] }
  0x5b   : > { %236 = vst.msk [vmem:[#allocation3] sm:$0xff] %vm233_vm0, %v1055_v0  ;;  %237 = vst.msk [vmem:[#allocation3 + $0x8] sm:$0xff] %vm233_vm0, %v1055_v0  ;;  %244 = vperm.xlu1 %898, %v238_v3   ;;  %v277_v6 = vmul.f32 %v239_v4, %v239_v4  ;;  %v241_v16 = vld [vmem:[%s1241_s19 + $0x1] sm:$0x1]  ;;  %v288_v21 = vmul.f32 %v240_v15, %v240_v15  ;;  %vm316_vm1 = vcmask 130048   ;;  %s1059_s26 = smov 126  }
  0x5c   : > { %280 = vrot.lane.b32.xlu0 %v276_v5, %s1058_s21  ;;  %v253_v12 = vshrl.u32 %v252_v11, 7  ;;  %v289_v23 = vmul.f32 %v241_v16, %v241_v16  ;;  %v1257_v44 = vand.u32 127, %v252_v11  ;;  %s1060_s30 = smov 1   ;;  %s1061_s27 = smov 2  }
  0x5d   : > { %s1062_s28 = smov 3   ;;  %s818_s29 = sshll.u32 %s1041_s12, 8 }
  0x5e   : > { %v254_v14 = vsub.s32 0, %v253_v12  ;;  %v290_v29 = vadd.f32 %v289_v23, %v288_v21  ;;  %s226_s3 = scalar_lea.vmem [#allocation9], %s809_s20  ;;  %s1472_s16 = scalar_lea.hbm %s1529_s2, %s818_s29 }
  0x5f   : > { %249 = vperm.xlu1 %898, %v239_v4   ;;  %s685_s25 = sshll.u32 %s226_s3, 4  ;;  %s670_s12 = scalar_lea.sflag [#allocation6], %s1229_s18  ;;  %s1474_s25 = int_to_ptr.vmem [resolvable:$true] %s685_s25 }
  0x60   : > { %282 = vrot.lane.b32.xlu0 %v277_v6, %s1058_s21  ;;  %v255_v18 = vrot.slane %v240_v15, %v254_v14  ;;  %v269_v19 = vrot.slane %v241_v16, %v254_v14  ;;  %v306_v31 = vrot.slane %v290_v29, %v254_v14  ;;  %s963_s20 = scalar_lea.vmem %s1474_s25, 256  ;;  %p1541_p3 = scmp.ne.s32.totalorder %s1534_s22, 0 }
  0x61   : > { %p964_p0 = scmp.ne.s32.totalorder %s1474_s25, %s963_s20  ;;  %s1063_s4 = smov [#allocation9]  }
  0x62   : > { %s967_s6 = sshll.u32 %s1063_s4, 4  ;;  %s968_s6 = int_to_ptr.vmem [resolvable:$false] %s967_s6 }
  0x63   : > { %900 = vset.pattern.permute.xlu1 %v1057_v2  ;;  %p965_p11 = pnand %p964_p0, %p1541_p3  ;;  %s969_s5 = scalar_lea.vmem %s968_s6, 512 }
  0x64   : > { %263 = vperm.xlu1 %900, %v239_v4   ;;  %259 = vperm.xlu0 %899, %v238_v3   ;;  %p970_p7 = scmp.lt.s32.totalorder %s1474_s25, %s968_s6  ;;  %p971_p10 = scmp.lt.s32.totalorder %s969_s5, %s963_s20 }
  0x65   : > { %p966_p4 = pneg %p965_p11 }
  0x66   : > { %p972_p12 = por %p971_p10, %p970_p7 }
  0x68   : > { %901 = vset.pattern.permute.xlu1 %v1055_v0  ;;  %902 = vset.pattern.permute.xlu0 %v1055_v0  ;;  %p973_p9 = pnand %p972_p12, %p966_p4 }
  0xce   : > { %v281_v7 = vpop.permute.xlu0 %280 }
  0xcf   : > { %v286_v8 = vadd.f32 %v281_v7, %v276_v5 }
  0xd1   : > { %293 = vperm.xlu1 %901, %v286_v8  }
  0xd2   : > { %v283_v9 = vpop.permute.xlu0 %282 }
  0xd3   : > { %v287_v10 = vadd.f32 %v283_v9, %v277_v6 }
  0xd5   : > { %298 = vperm.xlu0 %902, %v287_v10  }
  0xda   : > { %v245_v13 = vpop.permute.xlu1 %244 }
  0xdb   : > { %v256_v22 = vmul.f32 %v255_v18, %v245_v13 }
  0xde   : > { %v250_v17 = vpop.permute.xlu1 %249 }
  0xdf   : > { %v257_v26 = vmul.f32 %v255_v18, %v250_v17 }
  0xe3   : > { %v260_v20 = vpop.permute.xlu0 %259  ;;  %v264_v25 = vpop.permute.xlu1 %263 }
  0xe4   : > { %v270_v24 = vmul.f32 %v269_v19, %v260_v20  ;;  %v271_v27 = vmul.f32 %v269_v19, %v264_v25 }
  0xe6   : > { %v272_v28 = vadd.f32 %v270_v24, %v256_v22  ;;  %v273_v30 = vadd.f32 %v271_v27, %v257_v26 }
  0xe8   : > { %v274_v32 = vmul.f32 2.0, %v272_v28  ;;  %v275_v36 = vmul.f32 2.0, %v273_v30 }
 0x150   : > { %v294_v33 = vpop.permute.xlu1 %293 }
 0x151   : > { %v301_v34 = vsub.f32 %v294_v33, %v274_v32 }
 0x153   : > { %v307_v35 = vadd.f32 %v306_v31, %v301_v34 }
 0x154   : > { %v299_v37 = vpop.permute.xlu0 %298 }
 0x155   : > { %v309_v38 = vsub.f32 0.0, %v307_v35  ;;  %v302_v39 = vsub.f32 %v299_v37, %v275_v36 }
 0x157   : > { %v308_v40 = vadd.f32 %v306_v31, %v302_v39  ;;  %v317_v41 = vsel %vm316_vm1, %v309_v38, -inf }
 0x158   : > { %318 = vmax.xlane.f32.xlu1 %v317_v41 }
 0x159   : > { %v310_v42 = vsub.f32 0.0, %v308_v40 }
 0x15b   : > { %v320_v43 = vsel %vm316_vm1, %v310_v42, -inf }
 0x15c   : > { %321 = vmax.xlane.f32.xlu0 %v320_v43 }
 0x1e5   : > { %v1259_v45 = vpop.xlane.xlu1 %318 }
 0x1e6   : > { %vm323_vm2 = vcmp.eq.f32.partialorder %v309_v38, %v1259_v45 }
 0x1e7   : > { %v325_v46 = vsel %vm323_vm2, %v1257_v44, 2147483647 }
 0x1e8   : > { %v327_v47 = vsel %vm316_vm1, %v325_v46, 2147483647 }
 0x1e9   : > { %v1264_v48 = vpop.xlane.xlu0 %321  ;;  %v329_v49 = vshra.s32 %v327_v47, 16  ;;  %v328_v55 = vand.u32 65535, %v327_v47 }
 0x1ea   : > { %vm324_vm3 = vcmp.eq.f32.partialorder %v310_v42, %v1264_v48 }
 0x1eb   : > { %v331_v50 = vcvt.s32.f32 %v329_v49  ;;  %v326_v51 = vsel %vm324_vm3, %v1257_v44, 2147483647  ;;  %v330_v57 = vcvt.s32.f32 %v328_v55 }
 0x1ec   : > { %v342_v52 = vsel %vm316_vm1, %v326_v51, 2147483647 }
 0x1ed   : > { %332 = vmin.xlane.f32.xlu1 %v331_v50  ;;  %v344_v53 = vshra.s32 %v342_v52, 16  ;;  %v343_v58 = vand.u32 65535, %v342_v52 }
 0x1ef   : > { %v346_v54 = vcvt.s32.f32 %v344_v53  ;;  %v345_v61 = vcvt.s32.f32 %v343_v58 }
 0x1f1   : > { %347 = vmin.xlane.f32.xlu0 %v346_v54 }
 0x27a   : > { %v333_v56 = vpop.xlane.xlu1 %332 }
 0x27b   : > { %vm334_vm4 = vcmp.eq.f32.partialorder %v331_v50, %v333_v56  ;;  %v339_v63 = vcvt.f32.s32 %v333_v56 }
 0x27c   : > { %v335_v59 = vsel %vm334_vm4, %v330_v57, inf }
 0x27d   : > { %336 = vmin.xlane.f32.xlu1 %v335_v59  ;;  %v340_v1 = vshll.u32 %v339_v63, 16 }
 0x27e   : > { %v348_v60 = vpop.xlane.xlu0 %347 }
 0x27f   : > { %vm349_vm5 = vcmp.eq.f32.partialorder %v346_v54, %v348_v60  ;;  %v354_v2 = vcvt.f32.s32 %v348_v60 }
 0x280   : > { %v350_v62 = vsel %vm349_vm5, %v345_v61, inf }
 0x281   : > { %351 = vmin.xlane.f32.xlu0 %v350_v62  ;;  %v355_v6 = vshll.u32 %v354_v2, 16 }
 0x30a   : > { %v337_v0 = vpop.xlane.xlu1 %336 }
 0x30b   : > { %v338_v3 = vcvt.f32.s32 %v337_v0 }
 0x30d   : > { %v1269_v4 = vadd.s32 %v340_v1, %v338_v3 }
 0x30e   : > { %v352_v5 = vpop.xlane.xlu0 %351 }
 0x30f   : > { %v353_v7 = vcvt.f32.s32 %v352_v5  ;;  %vm357_vm6 = vcmp.eq.s32.totalorder %v1257_v44, %v1269_v4 }
 0x310   : > { %v359_v8 = vsel %vm357_vm6, -inf, %v309_v38 }
 0x311   : > { %v1273_v9 = vadd.s32 %v355_v6, %v353_v7  ;;  %v361_v10 = vsel %vm316_vm1, %v359_v8, -inf }
 0x312   : > { %362 = vmax.xlane.f32.xlu1 %v361_v10 }
 0x313   : > { %vm358_vm7 = vcmp.eq.s32.totalorder %v1257_v44, %v1273_v9 }
 0x314   : > { %v360_v11 = vsel %vm358_vm7, -inf, %v310_v42 }
 0x315   : > { %v364_v12 = vsel %vm316_vm1, %v360_v11, -inf }
 0x316   : > { %365 = vmax.xlane.f32.xlu0 %v364_v12 }
 0x39f   : > { %v1279_v13 = vpop.xlane.xlu1 %362 }
 0x3a0   : > { %vm367_vm8 = vcmp.eq.f32.partialorder %v359_v8, %v1279_v13 }
 0x3a1   : > { %v369_v14 = vsel %vm367_vm8, %v1257_v44, 2147483647 }
 0x3a2   : > { %v371_v15 = vsel %vm316_vm1, %v369_v14, 2147483647 }
 0x3a3   : > { %v1284_v16 = vpop.xlane.xlu0 %365  ;;  %v373_v17 = vshra.s32 %v371_v15, 16  ;;  %v372_v23 = vand.u32 65535, %v371_v15 }
 0x3a4   : > { %vm368_vm9 = vcmp.eq.f32.partialorder %v360_v11, %v1284_v16 }
 0x3a5   : > { %v375_v18 = vcvt.s32.f32 %v373_v17  ;;  %v370_v19 = vsel %vm368_vm9, %v1257_v44, 2147483647  ;;  %v374_v25 = vcvt.s32.f32 %v372_v23  ;;  %v1322_v23 = vld [vmem:[#allocation2 + $0x8] sm:$0xff] }
 0x3a6   : > { %v386_v20 = vsel %vm316_vm1, %v370_v19, 2147483647  ;;  %vm512_vm7 = vcmp.ge.f32.partialorder %v1322_v23, %v1264_v48  ;;  %vm506_vm8 = vcmp.ge.f32.partialorder %v1322_v23, %v1284_v16 }
 0x3a7   : > { %376 = vmin.xlane.f32.xlu1 %v375_v18  ;;  %v388_v21 = vshra.s32 %v386_v20, 16  ;;  %v387_v26 = vand.u32 65535, %v386_v20  ;;  %v1313_v20 = vld [vmem:[#allocation2] sm:$0xff] }
 0x3a8   : > { %vm511_vm6 = vcmp.ge.f32.partialorder %v1313_v20, %v1259_v45  ;;  %vm505_vm9 = vcmp.ge.f32.partialorder %v1313_v20, %v1279_v13 }
 0x3a9   : > { %v390_v22 = vcvt.s32.f32 %v388_v21  ;;  %v389_v29 = vcvt.s32.f32 %v387_v26  ;;  %v513_v21 = vsel %vm511_vm6, %v1313_v20, %v1259_v45  ;;  %v514_v26 = vsel %vm512_vm7, %v1322_v23, %v1264_v48 }
 0x3ab   : > { %391 = vmin.xlane.f32.xlu0 %v390_v22 }
 0x434   : > { %v377_v24 = vpop.xlane.xlu1 %376 }
 0x435   : > { %vm378_vm10 = vcmp.eq.f32.partialorder %v375_v18, %v377_v24  ;;  %v383_v31 = vcvt.f32.s32 %v377_v24 }
 0x436   : > { %v379_v27 = vsel %vm378_vm10, %v374_v25, inf  ;;  %v1327_v25 = vld [vmem:[#allocation3 + $0x8] sm:$0xff] }
 0x437   : > { %380 = vmin.xlane.f32.xlu1 %v379_v27  ;;  %v384_v33 = vshll.u32 %v383_v31, 16  ;;  %v516_v45 = vsel %vm512_vm7, %v1327_v25, %v1273_v9  ;;  %v507_v9 = vsel %vm505_vm9, %v1313_v20, %v1279_v13 }
 0x438   : > { %v392_v28 = vpop.xlane.xlu0 %391 }
 0x439   : > { %vm393_vm11 = vcmp.eq.f32.partialorder %v390_v22, %v392_v28  ;;  %v398_v34 = vcvt.f32.s32 %v392_v28  ;;  %v1320_v22 = vld [vmem:[#allocation3] sm:$0xff] }
 0x43a   : > { %v394_v30 = vsel %vm393_vm11, %v389_v29, inf  ;;  %v515_v24 = vsel %vm511_vm6, %v1320_v22, %v1269_v4  ;;  %v508_v4 = vsel %vm506_vm8, %v1322_v23, %v1284_v16  ;;  %vm605_vm6 = vcmask 7168  }
 0x43b   : > { %395 = vmin.xlane.f32.xlu0 %v394_v30  ;;  %v399_v38 = vshll.u32 %v398_v34, 16 }
 0x4c4   : > { %v381_v32 = vpop.xlane.xlu1 %380 }
 0x4c5   : > { %v382_v35 = vcvt.f32.s32 %v381_v32 }
 0x4c7   : > { %v1289_v36 = vadd.s32 %v384_v33, %v382_v35 }
 0x4c8   : > { %v396_v37 = vpop.xlane.xlu0 %395 }
 0x4c9   : > { %v397_v39 = vcvt.f32.s32 %v396_v37  ;;  %vm401_vm12 = vcmp.eq.s32.totalorder %v1257_v44, %v1289_v36 }
 0x4ca   : > { %v403_v40 = vsel %vm401_vm12, -inf, %v359_v8 }
 0x4cb   : > { %v1293_v41 = vadd.s32 %v399_v38, %v397_v39  ;;  %v405_v42 = vsel %vm316_vm1, %v403_v40, -inf }
 0x4cc   : > { %406 = vmax.xlane.f32.xlu1 %v405_v42 }
 0x4cd   : > { %vm402_vm13 = vcmp.eq.s32.totalorder %v1257_v44, %v1293_v41 }
 0x4ce   : > { %v404_v43 = vsel %vm402_vm13, -inf, %v360_v11 }
 0x4cf   : > { %v408_v46 = vsel %vm316_vm1, %v404_v43, -inf }
 0x4d0   : > { %409 = vmax.xlane.f32.xlu0 %v408_v46 }
 0x559   : > { %v1299_v47 = vpop.xlane.xlu1 %406 }
 0x55a   : > { %vm411_vm14 = vcmp.eq.f32.partialorder %v403_v40, %v1299_v47  ;;  %vm499_vm11 = vcmp.ge.f32.partialorder %v1313_v20, %v1299_v47 }
 0x55b   : > { %v413_v49 = vsel %vm411_vm14, %v1257_v44, 2147483647  ;;  %v501_v34 = vsel %vm499_vm11, %v1313_v20, %v1299_v47 }
 0x55c   : > { %v415_v50 = vsel %vm316_vm1, %v413_v49, 2147483647 }
 0x55d   : > { %v1304_v51 = vpop.xlane.xlu0 %409  ;;  %v417_v52 = vshra.s32 %v415_v50, 16  ;;  %v416_v58 = vand.u32 65535, %v415_v50  ;;  %v510_v50 = vsel %vm506_vm8, %v1327_v25, %v1293_v41 }
 0x55e   : > { %vm412_vm15 = vcmp.eq.f32.partialorder %v404_v43, %v1304_v51  ;;  %vm500_vm13 = vcmp.ge.f32.partialorder %v1322_v23, %v1304_v51 }
 0x55f   : > { %v419_v53 = vcvt.s32.f32 %v417_v52  ;;  %v414_v54 = vsel %vm412_vm15, %v1257_v44, 2147483647  ;;  %v418_v60 = vcvt.s32.f32 %v416_v58 }
 0x560   : > { %v430_v55 = vsel %vm316_vm1, %v414_v54, 2147483647 }
 0x561   : > { %420 = vmin.xlane.f32.xlu1 %v419_v53  ;;  %v432_v56 = vshra.s32 %v430_v55, 16  ;;  %v431_v61 = vand.u32 65535, %v430_v55 }
 0x563   : > { %v434_v57 = vcvt.s32.f32 %v432_v56  ;;  %v433_v0 = vcvt.s32.f32 %v431_v61 }
 0x565   : > { %435 = vmin.xlane.f32.xlu0 %v434_v57 }
 0x5ee   : > { %v421_v59 = vpop.xlane.xlu1 %420 }
 0x5ef   : > { %vm422_vm2 = vcmp.eq.f32.partialorder %v419_v53, %v421_v59  ;;  %v427_v2 = vcvt.f32.s32 %v421_v59 }
 0x5f0   : > { %v423_v62 = vsel %vm422_vm2, %v418_v60, inf }
 0x5f1   : > { %424 = vmin.xlane.f32.xlu1 %v423_v62  ;;  %v428_v5 = vshll.u32 %v427_v2, 16 }
 0x5f2   : > { %v436_v63 = vpop.xlane.xlu0 %435 }
 0x5f3   : > { %vm437_vm3 = vcmp.eq.f32.partialorder %v434_v57, %v436_v63  ;;  %v442_v6 = vcvt.f32.s32 %v436_v63 }
 0x5f4   : > { %v438_v1 = vsel %vm437_vm3, %v433_v0, inf }
 0x5f5   : > { %439 = vmin.xlane.f32.xlu0 %v438_v1  ;;  %v443_v11 = vshll.u32 %v442_v6, 16 }
 0x67e   : > { %v425_v3 = vpop.xlane.xlu1 %424 }
 0x67f   : > { %v426_v7 = vcvt.f32.s32 %v425_v3 }
 0x681   : > { %v429_v8 = vadd.s32 %v428_v5, %v426_v7 }
 0x682   : > { %v440_v10 = vpop.xlane.xlu0 %439 }
 0x683   : > { %v441_v12 = vcvt.f32.s32 %v440_v10  ;;  %vm445_vm4 = vcmp.eq.s32.totalorder %v1257_v44, %v429_v8  ;;  %v503_v39 = vsel %vm499_vm11, %v1320_v22, %v429_v8 }
 0x684   : > { %v447_v14 = vsel %vm445_vm4, -inf, %v403_v40 }
 0x685   : > { %v444_v15 = vadd.s32 %v443_v11, %v441_v12  ;;  %v449_v17 = vsel %vm316_vm1, %v447_v14, -inf }
 0x686   : > { %450 = vmax.xlane.f32.xlu1 %v449_v17 }
 0x687   : > { %vm446_vm5 = vcmp.eq.s32.totalorder %v1257_v44, %v444_v15  ;;  %v504_v47 = vsel %vm500_vm13, %v1327_v25, %v444_v15 }
 0x688   : > { %v448_v18 = vsel %vm446_vm5, -inf, %v404_v43 }
 0x689   : > { %v452_v19 = vsel %vm316_vm1, %v448_v18, -inf }
 0x68a   : > { %453 = vmax.xlane.f32.xlu0 %v452_v19 }
 0x697   : > { %541 = vrot.lane.b32.xlu1 %v513_v21, %s1059_s26 }
 0x69b   : > { %553 = vrot.lane.b32.xlu1 %v515_v24, %s1059_s26 }
 0x69f   : > { %555 = vrot.lane.b32.xlu1 %v516_v45, %s1059_s26 }
 0x6a0   : > { %543 = vrot.lane.b32.xlu0 %v514_v26, %s1059_s26 }
 0x6a3   : > { %521 = vrot.lane.b32.xlu1 %v508_v4, %s1059_s26 }
 0x6a4   : > { %519 = vrot.lane.b32.xlu0 %v507_v9, %s1059_s26 }
 0x713   : > { %v1353_v48 = vpop.xlane.xlu1 %450 }
 0x714   : > { %vm455_vm10 = vcmp.eq.f32.partialorder %v447_v14, %v1353_v48  ;;  %vm493_vm3 = vcmp.ge.f32.partialorder %v1313_v20, %v1353_v48 }
 0x715   : > { %v457_v27 = vsel %vm455_vm10, %v1257_v44, 2147483647  ;;  %v495_v2 = vsel %vm493_vm3, %v1313_v20, %v1353_v48 }
 0x716   : > { %v459_v28 = vsel %vm316_vm1, %v457_v27, 2147483647 }
 0x717   : > { %v1360_v29 = vpop.xlane.xlu0 %453  ;;  %v542_v30 = vpop.permute.xlu1 %541  ;;  %v461_v31 = vshra.s32 %v459_v28, 16  ;;  %v460_v13 = vand.u32 65535, %v459_v28 }
 0x718   : > { %vm456_vm12 = vcmp.eq.f32.partialorder %v448_v18, %v1360_v29  ;;  %vm547_vm14 = vcmp.ge.f32.partialorder %v501_v34, %v542_v30 }
 0x719   : > { %v463_v32 = vcvt.s32.f32 %v461_v31  ;;  %v458_v33 = vsel %vm456_vm12, %v1257_v44, 2147483647  ;;  %v502_v44 = vsel %vm500_vm13, %v1322_v23, %v1304_v51  ;;  %v509_v51 = vsel %vm505_vm9, %v1320_v22, %v1289_v36 }
 0x71a   : > { %v474_v35 = vsel %vm316_vm1, %v458_v33, 2147483647  ;;  %v549_v16 = vsel %vm547_vm14, %v501_v34, %v542_v30  ;;  %v551_v55 = vsel %vm547_vm14, %v542_v30, %v501_v34  ;;  %v462_v58 = vcvt.s32.f32 %v460_v13 }
 0x71b   : > { %464 = vmin.xlane.f32.xlu1 %v463_v32  ;;  %v554_v37 = vpop.permute.xlu1 %553  ;;  %v476_v38 = vshra.s32 %v474_v35, 16  ;;  %v544_v40 = vpop.permute.xlu0 %543  ;;  %v475_v59 = vand.u32 65535, %v474_v35  ;;  %vm494_vm1 = vcmp.ge.f32.partialorder %v1322_v23, %v1360_v29  ;;  %vm618_vm12 = vcmask 15368  }
 0x71c   : > { %v559_v42 = vsel %vm547_vm14, %v554_v37, %v503_v39  ;;  %vm548_vm15 = vcmp.ge.f32.partialorder %v502_v44, %v544_v40  ;;  %v557_v41 = vsel %vm547_vm14, %v503_v39, %v554_v37  ;;  %v496_v61 = vsel %vm494_vm1, %v1322_v23, %v1360_v29 }
 0x71d   : > { %v478_v43 = vcvt.s32.f32 %v476_v38  ;;  %v550_v52 = vsel %vm548_vm15, %v502_v44, %v544_v40  ;;  %v552_v54 = vsel %vm548_vm15, %v544_v40, %v502_v44  ;;  %v477_v0 = vcvt.s32.f32 %v475_v59 }
 0x71e   : > { %vm635_vm13 = vcmask 23568   ;;  %vm652_vm14 = vcmask 31768  }
 0x71f   : > { %v556_v46 = vpop.permute.xlu1 %555  ;;  %479 = vmin.xlane.f32.xlu0 %v478_v43  ;;  %v520_v36 = vpop.permute.xlu0 %519 }
 0x720   : > { %v560_v49 = vsel %vm548_vm15, %v556_v46, %v504_v47  ;;  %v558_v53 = vsel %vm548_vm15, %v504_v47, %v556_v46  ;;  %vm525_vm7 = vcmp.ge.f32.partialorder %v495_v2, %v520_v36 }
 0x721   : > { %v527_v10 = vsel %vm525_vm7, %v495_v2, %v520_v36  ;;  %v529_v28 = vsel %vm525_vm7, %v520_v36, %v495_v2 }
 0x723   : > { %v1395_v56 = vpop.permute.xlu1 %521 }
 0x724   : > { %vm526_vm4 = vcmp.ge.f32.partialorder %v496_v61, %v1395_v56 }
 0x725   : > { %v528_v3 = vsel %vm526_vm4, %v496_v61, %v1395_v56  ;;  %v530_v20 = vsel %vm526_vm4, %v1395_v56, %v496_v61 }
 0x72c   : > { %533 = vrot.lane.b32.xlu1 %v510_v50, %s1059_s26 }
 0x730   : > { %565 = vrot.lane.b32.xlu1 %v550_v52, %s1058_s21 }
 0x734   : > { %577 = vrot.lane.b32.xlu1 %v558_v53, %s1058_s21 }
 0x735   : > { %531 = vrot.lane.b32.xlu0 %v509_v51, %s1059_s26 }
 0x738   : > { %587 = vrot.lane.b32.xlu1 %v552_v54, %s1058_s21 }
 0x739   : > { %563 = vrot.lane.b32.xlu0 %v549_v16, %s1058_s21 }
 0x73d   : > { %575 = vrot.lane.b32.xlu0 %v557_v41, %s1058_s21 }
 0x741   : > { %585 = vrot.lane.b32.xlu0 %v551_v55, %s1058_s21 }
 0x7a8   : > { %v465_v57 = vpop.xlane.xlu1 %464 }
 0x7a9   : > { %vm466_vm2 = vcmp.eq.f32.partialorder %v463_v32, %v465_v57  ;;  %v471_v19 = vcvt.f32.s32 %v465_v57 }
 0x7aa   : > { %v467_v60 = vsel %vm466_vm2, %v462_v58, inf }
 0x7ab   : > { %468 = vmin.xlane.f32.xlu0 %v467_v60  ;;  %v472_v45 = vshll.u32 %v471_v19, 16 }
 0x7ac   : > { %v534_v62 = vpop.permute.xlu1 %533  ;;  %v480_v63 = vpop.xlane.xlu0 %479 }
 0x7ad   : > { %vm481_vm5 = vcmp.eq.f32.partialorder %v478_v43, %v480_v63  ;;  %v486_v26 = vcvt.f32.s32 %v480_v63 }
 0x7ae   : > { %v482_v1 = vsel %vm481_vm5, %v477_v0, inf }
 0x7af   : > { %483 = vmin.xlane.f32.xlu1 %v482_v1  ;;  %v487_v30 = vshll.u32 %v486_v26, 16 }
 0x7b0   : > { %v566_v5 = vpop.permute.xlu1 %565  ;;  %v532_v6 = vpop.permute.xlu0 %531 }
 0x7b1   : > { %vm570_vm8 = vcmp.ge.f32.partialorder %v528_v3, %v566_v5 }
 0x7b2   : > { %v572_v7 = vsel %vm570_vm8, %v528_v3, %v566_v5  ;;  %v574_v8 = vsel %vm570_vm8, %v566_v5, %v528_v3 }
 0x7b3   : > { %607 = vst.msk [vmem:[#allocation2 + $0x8] sm:$0xff] %vm605_vm6, %v572_v7 }
 0x7b4   : > { %v564_v11 = vpop.permute.xlu0 %563  ;;  %v578_v17 = vpop.permute.xlu1 %577 }
 0x7b5   : > { %vm569_vm9 = vcmp.ge.f32.partialorder %v527_v10, %v564_v11 }
 0x7b6   : > { %v571_v12 = vsel %vm569_vm9, %v527_v10, %v564_v11  ;;  %v573_v14 = vsel %vm569_vm9, %v564_v11, %v527_v10 }
 0x7b7   : > { %606 = vst.msk [vmem:[#allocation2] sm:$0xff] %vm605_vm6, %v571_v12 }
 0x7b8   : > { %v576_v15 = vpop.permute.xlu0 %575  ;;  %v588_v21 = vpop.permute.xlu1 %587 }
 0x7b9   : > { %vm592_vm11 = vcmp.ge.f32.partialorder %v530_v20, %v588_v21 }
 0x7ba   : > { %v596_v52 = vsel %vm592_vm11, %v588_v21, %v530_v20 }
 0x7bc   : > { %v586_v18 = vpop.permute.xlu0 %585 }
 0x7bd   : > { %vm591_vm10 = vcmp.ge.f32.partialorder %v529_v28, %v586_v18 }
 0x7be   : > { %v593_v23 = vsel %vm591_vm10, %v529_v28, %v586_v18  ;;  %v595_v29 = vsel %vm591_vm10, %v586_v18, %v529_v28 }
 0x7c0   : > { %599 = vrot.lane.b32.xlu1 %v560_v49, %s1058_s21 }
 0x7c1   : > { %597 = vrot.lane.b32.xlu0 %v559_v42, %s1058_s21 }
 0x838   : > { %v469_v24 = vpop.xlane.xlu0 %468 }
 0x839   : > { %v470_v4 = vcvt.f32.s32 %v469_v24 }
 0x83b   : > { %v473_v9 = vadd.s32 %v472_v45, %v470_v4 }
 0x83c   : > { %v484_v27 = vpop.xlane.xlu1 %483  ;;  %v598_v33 = vpop.permute.xlu0 %597 }
 0x83d   : > { %v485_v31 = vcvt.f32.s32 %v484_v27  ;;  %v497_v32 = vsel %vm493_vm3, %v1320_v22, %v473_v9 }
 0x83e   : > { %v535_v34 = vsel %vm525_vm7, %v497_v32, %v532_v6  ;;  %v537_v35 = vsel %vm525_vm7, %v532_v6, %v497_v32 }
 0x83f   : > { %v488_v37 = vadd.s32 %v487_v30, %v485_v31  ;;  %v581_v38 = vsel %vm569_vm9, %v576_v15, %v535_v34  ;;  %v579_v39 = vsel %vm569_vm9, %v535_v34, %v576_v15  ;;  %v601_v40 = vsel %vm591_vm10, %v537_v35, %v598_v33 }
 0x840   : > { %621 = vrot.lane.b32.xlu0 %v581_v38, %s1060_s30  ;;  %v603_v42 = vsel %vm591_vm10, %v598_v33, %v537_v35  ;;  %608 = vst.msk [vmem:[#allocation3] sm:$0xff] %vm605_vm6, %v579_v39  ;;  %v600_v48 = vpop.permute.xlu1 %599 }
 0x841   : > { %v498_v22 = vsel %vm494_vm1, %v1327_v25, %v488_v37  ;;  %v594_v25 = vsel %vm592_vm11, %v530_v20, %v588_v21 }
 0x842   : > { %v536_v43 = vsel %vm526_vm4, %v498_v22, %v534_v62  ;;  %v538_v44 = vsel %vm526_vm4, %v534_v62, %v498_v22 }
 0x843   : > { %v582_v46 = vsel %vm570_vm8, %v578_v17, %v536_v43  ;;  %v580_v47 = vsel %vm570_vm8, %v536_v43, %v578_v17  ;;  %v602_v49 = vsel %vm592_vm11, %v538_v44, %v600_v48  ;;  %v604_v50 = vsel %vm592_vm11, %v600_v48, %v538_v44 }
 0x844   : > { %623 = vrot.lane.b32.xlu1 %v582_v46, %s1060_s30  ;;  %638 = vrot.lane.b32.xlu0 %v601_v40, %s1061_s27  ;;  %609 = vst.msk [vmem:[#allocation3 + $0x8] sm:$0xff] %vm605_vm6, %v580_v47 }
 0x848   : > { %640 = vrot.lane.b32.xlu1 %v602_v49, %s1061_s27  ;;  %655 = vrot.lane.b32.xlu0 %v603_v42, %s1062_s28 }
 0x84c   : > { %657 = vrot.lane.b32.xlu1 %v604_v50, %s1062_s28  ;;  %612 = vrot.lane.b32.xlu0 %v573_v14, %s1060_s30 }
 0x850   : > { %614 = vrot.lane.b32.xlu1 %v574_v8, %s1060_s30  ;;  %629 = vrot.lane.b32.xlu0 %v593_v23, %s1061_s27 }
 0x854   : > { %631 = vrot.lane.b32.xlu1 %v594_v25, %s1061_s27  ;;  %646 = vrot.lane.b32.xlu0 %v595_v29, %s1062_s28 }
 0x858   : > { %648 = vrot.lane.b32.xlu1 %v596_v52, %s1062_s28 }
 0x8b2   : > { %v622_v53 = vpop.permute.xlu0 %621 }
 0x8b3   : > { %625 = vst.msk [vmem:[#allocation3] sm:$0xff] %vm618_vm12, %v622_v53 }
 0x8b6   : > { %v624_v51 = vpop.permute.xlu1 %623  ;;  %v639_v54 = vpop.permute.xlu0 %638 }
 0x8b7   : > { %626 = vst.msk [vmem:[#allocation3 + $0x8] sm:$0xff] %vm618_vm12, %v624_v51 }
 0x8b8   : > { %642 = vst.msk [vmem:[#allocation3] sm:$0xff] %vm635_vm13, %v639_v54 }
 0x8ba   : > { %v641_v16 = vpop.permute.xlu1 %640  ;;  %v656_v41 = vpop.permute.xlu0 %655 }
 0x8bb   : > { %643 = vst.msk [vmem:[#allocation3 + $0x8] sm:$0xff] %vm635_vm13, %v641_v16 }
 0x8bc   : > { %659 = vst.msk [vmem:[#allocation3] sm:$0xff] %vm652_vm14, %v656_v41 }
 0x8be   : > { %v658_v55 = vpop.permute.xlu1 %657  ;;  %v613_v56 = vpop.permute.xlu0 %612 }
 0x8bf   : > { %660 = vst.msk [vmem:[#allocation3 + $0x8] sm:$0xff] %vm652_vm14, %v658_v55 }
 0x8c0   : > { %619 = vst.msk [vmem:[#allocation2] sm:$0xff] %vm618_vm12, %v613_v56 }
 0x8c2   : > { %v615_v13 = vpop.permute.xlu1 %614  ;;  %v630_v36 = vpop.permute.xlu0 %629 }
 0x8c3   : > { %v664_v57 = vld [vmem:[#allocation3] sm:$0xff]  ;;  %620 = vst.msk [vmem:[#allocation2 + $0x8] sm:$0xff] %vm618_vm12, %v615_v13 }
 0x8c4   : > { %636 = vst.msk [vmem:[#allocation2] sm:$0xff] %vm635_vm13, %v630_v36 }
 0x8c5   : > { %667 = vst.msk [vmem:[%s226_s3] sm:$0xff] %vm233_vm0, %v664_v57 }
 0x8c6   : > { %v632_v58 = vpop.permute.xlu1 %631  ;;  %v647_v59 = vpop.permute.xlu0 %646  ;;  %v665_v60 = vld [vmem:[#allocation3 + $0x8] sm:$0xff] }
 0x8c7   : > { %637 = vst.msk [vmem:[#allocation2 + $0x8] sm:$0xff] %vm635_vm13, %v632_v58 }
 0x8c8   : > { %653 = vst.msk [vmem:[#allocation2] sm:$0xff] %vm652_vm14, %v647_v59 }
 0x8c9   : > { %668 = vst.msk [vmem:[%s226_s3 + $0x8] sm:$0xff] %vm233_vm0, %v665_v60 }
 0x8ca   : > { %976 = shalt.err (!%p973_p9)
}
 0x8cb   : > { %s977_s15 = scalar_lea.hbm %s1472_s16, 256  ;;  %s981_s26 = scalar_lea.hbm %s1529_s2, 512 }
 0x8cc   : > { %p978_p1 = scmp.ne.s32.totalorder %s1472_s16, %s977_s15  ;;  %p982_p5 = scmp.lt.u32.totalorder %s1472_s16, %s1529_s2 }
 0x8cd   : > { %p983_p13 = scmp.lt.u32.totalorder %s981_s26, %s977_s15  ;;  %p985_p0 = scmp.lt.u32.totalorder %s977_s15, %s1472_s16 }
 0x8ce   : > { %p979_p6 = pnand %p978_p1, %p1541_p3 }
 0x8cf   : > { %p984_p8 = por %p983_p13, %p982_p5 }
 0x8d0   : > { %p980_p2 = pneg %p979_p6 }
 0x8d1   : > { %p986_p11 = por %p985_p0, %p984_p8 }
 0x8d3   : > { %p987_p4 = pnand %p986_p11, %p980_p2 }
 0x8d5   : > { %990 = shalt.err (!%p987_p4)
}
 0x8d6   : > { %s1064_s28 = smov 128   ;;  %s1065_s29 = smov 8   ;;  %v649_v61 = vpop.permute.xlu1 %648 }
 0x8d7   : > { %823 = dma.vmem_to_hbm [thread:$0]  (%p1541_p3), %s1474_s25, 256, %s1472_s16, %s670_s12, %s1064_s28, %s1064_s28, %s1065_s29   ;;  %654 = vst.msk [vmem:[#allocation2 + $0x8] sm:$0xff] %vm652_vm14, %v649_v61 }
 0x8d8 PF: > { %s700_s3 = sand.u32 1, %s1029_s9   ;;  %p1542_p7 = scmp.ne.s32.totalorder %s1535_s24, 0 }
 0x8d9   : > { %p1543_p10 = scmp.ge.s32.totalorder %s1049_s14, 2  ;;  %s701_s7 = scalar_lea.sflag [#allocation6], %s700_s3 }
 0x8db   : > { %p833_p12 = pnand %p1543_p10, %p1542_p7 }
 0x8dd   : > { %1024 = dma.done.wait (!%p833_p12), %s701_s7, 256  }
 0x8de   : > { %1026 = vsyncadd (!%p833_p12), %s701_s7, 4294967040  ;;  %s21_s14 = sadd.s32 1, %s1049_s14   ;;  %s1544_s9 = smov %s1033_s10 }
 0x8df   : > { %p18_p9 = scmp.ge.s32.totalorder %s21_s14, 4   ;;  %s1545_s10 = smov %s1037_s11 }
 0x8e0   : > { %s1546_s11 = smov %s1137_s23  ;;  %s1547_s12 = smov %s1045_s13 }
 0x8e1   : > { %s1548_s13 = smov %s1550_s17  ;;  %20 = sbr.rel (!%p18_p9) target bundleno = 8 (0x8), region = 94 }
 0x8e8   :  { %706 = vsyncpa [#allocation5], 1 }
 0x8e9   :  { %708 = vsyncpa [#allocation5 + $0x1], 1 }
 0x8ea   :  { %709 = vsyncpa [#allocation8], 1 }
 0x8eb   :  { %711 = vsyncpa [#allocation8 + $0x1], 1 }
 0x8ec   :  { %712 = vsyncpa [#allocation6], 1 }
 0x8ed   :  { %714 = vsyncpa [#allocation6 + $0x1], 1 }

// kernel: geometric_unit_forward.3
= control target key start
LH: loop header
LB: loop body
LE: loop exit
PB: predicated region body
PF: predicated region fallthrough
CT: control target
= control target key end

     0   :  { %11 = vsyncpa [#allocation3], 0  ;;  %s551_s0 = inlined_call_operand.hbm [shape: f32[6,16], index: 0, kind: input, shape index: {}]   ;;  %s552_s1 = inlined_call_operand.hbm [shape: f32[6,16], index: 1, kind: input, shape index: {}]   ;;  %s553_s2 = inlined_call_operand.hbm [shape: f32[6,6], index: 2, kind: input, shape index: {}]   ;;  %s554_s3 = inlined_call_operand.hbm [shape: f32[6,1], index: 3, kind: input, shape index: {}]   ;;  %s555_s4 = inlined_call_operand.hbm [shape: f32[1,16], index: 4, kind: input, shape index: {}]   ;;  %s556_s5 = inlined_call_operand.hbm [shape: f32[1,16], index: 5, kind: input, shape index: {}]   ;;  %s557_s6 = inlined_call_operand.hbm [shape: f32[6,16], index: 6, kind: output, shape index: {}]  }
   0x1   :  { %12 = vsyncpa [#allocation6], 0 }
   0x2   :  { %13 = vsyncpa [#allocation9], 0 }
   0x3   :  { %14 = vsyncpa [#allocation12], 0 }
   0x4   :  { %15 = vsyncpa [#allocation4], 0  ;;  %s412_s21 = smov [#allocation5]   ;;  %s413_s23 = smov [#allocation8]  }
   0x5   :  { %s32_s22 = sshll.u32 %s412_s21, 4  ;;  %s52_s24 = sshll.u32 %s413_s23, 4  ;;  %s33_s22 = int_to_ptr.vmem [resolvable:$true] %s32_s22  ;;  %s53_s24 = int_to_ptr.vmem [resolvable:$true] %s52_s24 }
   0x6   :  { %s248_s27 = scalar_lea.hbm %s552_s1, 128 }
   0x7   :  { %p249_p0 = scmp.ne.s32.totalorder %s552_s1, %s248_s27  ;;  %p252_p1 = scmp.lt.u32.totalorder %s248_s27, %s552_s1 }
   0x9   :  { %p254_p2 = pnand %p252_p1, %p249_p0 }
   0xb   :  { %257 = shalt.err (!%p254_p2)
}
   0xc   :  { %s258_s8 = scalar_lea.vmem %s33_s22, 128  ;;  %p263_p4 = scmp.lt.s32.totalorder %s33_s22, %s33_s22 }
   0xd   :  { %p259_p3 = scmp.ne.s32.totalorder %s33_s22, %s258_s8  ;;  %p264_p5 = scmp.lt.s32.totalorder %s258_s8, %s258_s8 }
   0xf   :  { %p265_p6 = por %p264_p5, %p263_p4 }
  0x11   :  { %p266_p7 = pnand %p265_p6, %p259_p3 }
  0x13   :  { %269 = shalt.err (!%p266_p7)
}
  0x14   :  { %35 = dma.hbm_to_vmem [thread:$0]  %s552_s1, 128, %s33_s22, [#allocation6]  }
  0x15   :  { %s270_s13 = scalar_lea.hbm %s554_s3, 128 }
  0x16   :  { %p271_p8 = scmp.ne.s32.totalorder %s554_s3, %s270_s13  ;;  %p274_p9 = scmp.lt.u32.totalorder %s270_s13, %s554_s3 }
  0x18   :  { %p276_p10 = pnand %p274_p9, %p271_p8 }
  0x1a   :  { %279 = shalt.err (!%p276_p10)
}
  0x1b   :  { %s280_s18 = scalar_lea.vmem %s53_s24, 128  ;;  %p285_p12 = scmp.lt.s32.totalorder %s53_s24, %s53_s24 }
  0x1c   :  { %p281_p11 = scmp.ne.s32.totalorder %s53_s24, %s280_s18  ;;  %p286_p13 = scmp.lt.s32.totalorder %s280_s18, %s280_s18 }
  0x1e   :  { %p287_p0 = por %p286_p13, %p285_p12 }
  0x20   :  { %p288_p1 = pnand %p287_p0, %p281_p11 }
  0x22   :  { %291 = shalt.err (!%p288_p1)
}
  0x23   :  { %55 = dma.hbm_to_vmem [thread:$0]  %s554_s3, 128, %s53_s24, [#allocation9]  }
  0x24   :  { %s414_s20 = smov [#allocation2]   ;;  %s415_s22 = smov [#allocation7]  }
  0x25   :  { %s22_s21 = sshll.u32 %s414_s20, 4  ;;  %s42_s23 = sshll.u32 %s415_s22, 4  ;;  %s23_s21 = int_to_ptr.vmem [resolvable:$true] %s22_s21  ;;  %s43_s23 = int_to_ptr.vmem [resolvable:$true] %s42_s23 }
  0x26   :  { %s292_s27 = scalar_lea.hbm %s551_s0, 128 }
  0x27   :  { %p293_p2 = scmp.ne.s32.totalorder %s551_s0, %s292_s27  ;;  %p296_p3 = scmp.lt.u32.totalorder %s292_s27, %s551_s0 }
  0x29   :  { %p298_p4 = pnand %p296_p3, %p293_p2 }
  0x2b   :  { %301 = shalt.err (!%p298_p4)
}
  0x2c   :  { %s302_s3 = scalar_lea.vmem %s23_s21, 128  ;;  %p307_p6 = scmp.lt.s32.totalorder %s23_s21, %s23_s21 }
  0x2d   :  { %p303_p5 = scmp.ne.s32.totalorder %s23_s21, %s302_s3  ;;  %p308_p7 = scmp.lt.s32.totalorder %s302_s3, %s302_s3 }
  0x2f   :  { %p309_p8 = por %p308_p7, %p307_p6 }
  0x31   :  { %p310_p9 = pnand %p309_p8, %p303_p5 }
  0x33   :  { %313 = shalt.err (!%p310_p9)
}
  0x34   :  { %25 = dma.hbm_to_vmem [thread:$0]  %s551_s0, 128, %s23_s21, [#allocation3]  }
  0x35   :  { %s314_s11 = scalar_lea.hbm %s553_s2, 128 }
  0x36   :  { %p315_p10 = scmp.ne.s32.totalorder %s553_s2, %s314_s11  ;;  %p318_p11 = scmp.lt.u32.totalorder %s314_s11, %s553_s2 }
  0x38   :  { %p320_p12 = pnand %p318_p11, %p315_p10 }
  0x3a   :  { %323 = shalt.err (!%p320_p12)
}
  0x3b   :  { %s324_s16 = scalar_lea.vmem %s43_s23, 128  ;;  %p329_p0 = scmp.lt.s32.totalorder %s43_s23, %s43_s23 }
  0x3c   :  { %p325_p13 = scmp.ne.s32.totalorder %s43_s23, %s324_s16  ;;  %p330_p1 = scmp.lt.s32.totalorder %s324_s16, %s324_s16 }
  0x3e   :  { %p331_p2 = por %p330_p1, %p329_p0 }
  0x40   :  { %p332_p3 = pnand %p331_p2, %p325_p13 }
  0x42   :  { %335 = shalt.err (!%p332_p3)
}
  0x43   :  { %45 = dma.hbm_to_vmem [thread:$0]  %s553_s2, 128, %s43_s23, [#allocation6]  }
  0x44   :  { %s416_s18 = smov [#allocation10]   ;;  %s417_s19 = smov [#allocation11]  }
  0x45   :  { %s62_s1 = sshll.u32 %s416_s18, 4  ;;  %s72_s20 = sshll.u32 %s417_s19, 4  ;;  %s63_s1 = int_to_ptr.vmem [resolvable:$true] %s62_s1  ;;  %s73_s20 = int_to_ptr.vmem [resolvable:$true] %s72_s20 }
  0x46   :  { %s336_s25 = scalar_lea.hbm %s555_s4, 16 }
  0x47   :  { %p337_p4 = scmp.ne.s32.totalorder %s555_s4, %s336_s25  ;;  %p340_p5 = scmp.lt.u32.totalorder %s336_s25, %s555_s4 }
  0x49   :  { %p342_p6 = pnand %p340_p5, %p337_p4 }
  0x4b   :  { %345 = shalt.err (!%p342_p6)
}
  0x4c   :  { %s346_s2 = scalar_lea.vmem %s63_s1, 16  ;;  %s350_s23 = scalar_lea.vmem %s63_s1, 32 }
  0x4d   :  { %p347_p7 = scmp.ne.s32.totalorder %s63_s1, %s346_s2  ;;  %p351_p8 = scmp.lt.s32.totalorder %s63_s1, %s63_s1 }
  0x4e   :  { %p352_p9 = scmp.lt.s32.totalorder %s350_s23, %s346_s2 }
  0x50   :  { %p353_p10 = por %p352_p9, %p351_p8 }
  0x52   :  { %p354_p11 = pnand %p353_p10, %p347_p7 }
  0x54   :  { %357 = shalt.err (!%p354_p11)
}
  0x55   :  { %65 = dma.hbm_to_vmem [thread:$0]  %s555_s4, 16, %s63_s1, [#allocation9]  }
  0x56   :  { %s358_s8 = scalar_lea.hbm %s556_s5, 16 }
  0x57   :  { %p359_p12 = scmp.ne.s32.totalorder %s556_s5, %s358_s8  ;;  %p362_p13 = scmp.lt.u32.totalorder %s358_s8, %s556_s5 }
  0x59   :  { %p364_p0 = pnand %p362_p13, %p359_p12 }
  0x5b   :  { %367 = shalt.err (!%p364_p0)
}
  0x5c   :  { %s368_s13 = scalar_lea.vmem %s73_s20, 16  ;;  %s372_s14 = scalar_lea.vmem %s73_s20, 32 }
  0x5d   :  { %p369_p1 = scmp.ne.s32.totalorder %s73_s20, %s368_s13  ;;  %p373_p2 = scmp.lt.s32.totalorder %s73_s20, %s73_s20 }
  0x5e   :  { %p374_p3 = scmp.lt.s32.totalorder %s372_s14, %s368_s13 }
  0x60   :  { %p375_p4 = por %p374_p3, %p373_p2 }
  0x62   :  { %p376_p5 = pnand %p375_p4, %p369_p1 }
  0x64   :  { %379 = shalt.err (!%p376_p5)
}
  0x65   :  { %75 = dma.hbm_to_vmem [thread:$0]  %s556_s5, 16, %s73_s20, [#allocation12]  }
  0x66   :  { %402 = dma.done.wait [#allocation3], 128  }
  0x67   :  { %403 = vsyncadd [#allocation3], 4294967168 }
  0x68   :  { %404 = dma.done.wait [#allocation6], 256  }
  0x69   :  { %405 = vsyncadd [#allocation6], 4294967040 }
  0x6a   :  { %406 = dma.done.wait [#allocation9], 144  }
  0x6b   :  { %407 = vsyncadd [#allocation9], 4294967152 }
  0x6c   :  { %408 = dma.done.wait [#allocation12], 16  }
  0x6d   :  { %409 = vsyncadd [#allocation12], 4294967280  ;;  %v418_v0 = vmov 0   ;;  %v419_v1 = vmov 2   ;;  %v97_v2 = vld [vmem:[#allocation7] sm:$0x3f]  ;;  %v103_v8 = vlaneseq }
  0x6e   :  { %238 = vset.pattern.permute.xlu0 %v418_v0  ;;  %240 = vset.pattern.permute.xlu1 %v419_v1  ;;  %v420_v3 = vmov 1   ;;  %v421_v4 = vmov 3   ;;  %v422_v5 = vmov 4   ;;  %v423_v6 = vmov 5   ;;  %v158_v7 = vld [vmem:[#allocation8] sm:$0x3f] }
  0x6f   :  { %100 = vperm.xlu0 %238, %v97_v2   ;;  %119 = vperm.xlu1 %240, %v97_v2   ;;  %v104_v9 = vshrl.u32 %v103_v8, 7  ;;  %v532_v10 = vld [vmem:[#allocation2] sm:$0x3f]  ;;  %v95_v11 = vld [vmem:[#allocation5] sm:$0x3f]  ;;  %vm165_vm0 = vcmask 128000  }
  0x70   :  { %v96_v13 = vsub.f32 %v532_v10, %v95_v11  ;;  %v186_v63 = vld [vmem:[#allocation10] sm:$0x1]  ;;  %s424_s5 = smov [#allocation13]  }
  0x71   :  { %v105_v12 = vsub.s32 0, %v104_v9  ;;  %v114_v14 = vsub.s32 1, %v104_v9  ;;  %v124_v16 = vsub.s32 2, %v104_v9  ;;  %v134_v20 = vsub.s32 3, %v104_v9  ;;  %s212_s16 = sshll.u32 %s424_s5, 4  ;;  %s213_s16 = int_to_ptr.vmem [resolvable:$true] %s212_s16 }
  0x72   :  { %v144_v21 = vsub.s32 4, %v104_v9  ;;  %v154_v23 = vsub.s32 5, %v104_v9  ;;  %s380_s0 = scalar_lea.vmem %s213_s16, 128  ;;  %p385_p7 = scmp.lt.s32.totalorder %s213_s16, %s213_s16 }
  0x73   :  { %239 = vset.pattern.permute.xlu0 %v420_v3  ;;  %241 = vset.pattern.permute.xlu1 %v421_v4  ;;  %v106_v18 = vrot.slane %v96_v13, %v105_v12  ;;  %v115_v19 = vrot.slane %v96_v13, %v114_v14  ;;  %v125_v22 = vrot.slane %v96_v13, %v124_v16  ;;  %v224_v3 = vld [vmem:[#allocation11] ss:$0 sm:$0xff]  ;;  %p381_p6 = scmp.ne.s32.totalorder %s213_s16, %s380_s0  ;;  %p386_p8 = scmp.lt.s32.totalorder %s380_s0, %s380_s0 }
  0x74   :  { %109 = vperm.xlu0 %239, %v97_v2   ;;  %129 = vperm.xlu1 %241, %v97_v2   ;;  %v135_v28 = vrot.slane %v96_v13, %v134_v20  ;;  %v145_v29 = vrot.slane %v96_v13, %v144_v21  ;;  %v155_v32 = vrot.slane %v96_v13, %v154_v23 }
  0x75   :  { %p387_p9 = por %p386_p8, %p385_p7 }
  0x77   :  { %p388_p10 = pnand %p387_p9, %p381_p6 }
  0x78   :  { %242 = vset.pattern.permute.xlu1 %v422_v5  ;;  %243 = vset.pattern.permute.xlu0 %v423_v6 }
  0x79   :  { %139 = vperm.xlu1 %242, %v97_v2   ;;  %149 = vperm.xlu0 %243, %v97_v2  }
  0x7d   :  { %244 = vset.pattern.permute.xlu1 %v418_v0  ;;  %245 = vset.pattern.permute.xlu0 %v418_v0 }
  0x7e   :  { %161 = vperm.xlu1 %244, %v158_v7  }
  0xee   :  { %v101_v15 = vpop.permute.xlu0 %100  ;;  %v120_v17 = vpop.permute.xlu1 %119 }
  0xef   :  { %v107_v26 = vmul.f32 %v106_v18, %v101_v15  ;;  %v126_v30 = vmul.f32 %v125_v22, %v120_v17 }
  0xf3   :  { %v110_v24 = vpop.permute.xlu0 %109  ;;  %v130_v25 = vpop.permute.xlu1 %129 }
  0xf4   :  { %v116_v27 = vmul.f32 %v115_v19, %v110_v24  ;;  %v136_v34 = vmul.f32 %v135_v28, %v130_v25 }
  0xf6   :  { %v117_v31 = vadd.f32 %v116_v27, %v107_v26 }
  0xf8   :  { %v127_v33 = vadd.f32 %v126_v30, %v117_v31  ;;  %v140_v35 = vpop.permute.xlu1 %139  ;;  %v150_v36 = vpop.permute.xlu0 %149 }
  0xf9   :  { %v146_v37 = vmul.f32 %v145_v29, %v140_v35  ;;  %v156_v39 = vmul.f32 %v155_v32, %v150_v36 }
  0xfa   :  { %v137_v38 = vadd.f32 %v136_v34, %v127_v33 }
  0xfc   :  { %v147_v40 = vadd.f32 %v146_v37, %v137_v38 }
  0xfd   :  { %v162_v41 = vpop.permute.xlu1 %161 }
  0xfe   :  { %v157_v42 = vadd.f32 %v156_v39, %v147_v40 }
 0x100   :  { %v164_v43 = vadd.f32 %v162_v41, %v157_v42 }
 0x102   :  { %v166_v44 = vsel %vm165_vm0, %v164_v43, 0.0 }
 0x103   :  { %v167_v45 = vrot.slane %v166_v44, 4 }
 0x105   :  { %v168_v46 = vadd.f32 %v167_v45, %v166_v44 }
 0x107   :  { %v169_v47 = vrot.slane %v168_v46, 2 }
 0x109   :  { %v170_v48 = vadd.f32 %v169_v47, %v168_v46 }
 0x10b   :  { %v171_v49 = vrot.slane %v170_v48, 1 }
 0x10d   :  { %v172_v50 = vadd.f32 %v171_v49, %v170_v48 }
 0x10f   :  { %v173_v51 = vmul.f32 0.16666667, %v172_v50 }
 0x111   :  { %v174_v52 = vsub.f32 %v164_v43, %v173_v51 }
 0x113   :  { %v175_v53 = vmul.f32 %v174_v52, %v174_v52 }
 0x115   :  { %v176_v54 = vsel %vm165_vm0, %v175_v53, 0.0 }
 0x116   :  { %v177_v55 = vrot.slane %v176_v54, 4 }
 0x118   :  { %v178_v56 = vadd.f32 %v177_v55, %v176_v54 }
 0x11a   :  { %v179_v57 = vrot.slane %v178_v56, 2 }
 0x11c   :  { %v180_v58 = vadd.f32 %v179_v57, %v178_v56 }
 0x11e   :  { %v181_v59 = vrot.slane %v180_v58, 1 }
 0x120   :  { %v182_v60 = vadd.f32 %v181_v59, %v180_v58 }
 0x122   :  { %v183_v61 = vmul.f32 0.16666667, %v182_v60 }
 0x124   :  { %v184_v62 = vadd.f32 1e-05, %v183_v61 }
 0x126   :  { %246 = vrsqrt.f32 %v184_v62 }
 0x130   :  { %v247_v0 = vpop.eup %246 }
 0x131   :  { %v187_v1 = vmul.f32 %v247_v0, %v186_v63 }
 0x133   :  { %v191_v2 = vrot.slane %v187_v1, %v105_v12 }
 0x135   :  { %v192_v4 = vmul.f32 %v191_v2, %v174_v52 }
 0x137   :  { %v200_v5 = vadd.f32 %v224_v3, %v192_v4 }
 0x139   :  { %v202_v6 = vmul.f32 0.1, %v200_v5  ;;  %vm201_vm1 = vcmp.ge.f32.partialorder %v200_v5, 0.0 }
 0x13b   :  { %v203_v7 = vsel %vm201_vm1, %v200_v5, %v202_v6 }
 0x13c   :  { %v204_v8 = vadd.f32 %v203_v7, %v532_v10 }
 0x13e   :  { %205 = vst.msk [vmem:[#allocation13] sm:$0x3f] %vm165_vm0, %v204_v8 }
 0x13f   :  { %391 = shalt.err (!%p388_p10)
}
 0x140   :  { %s392_s1 = scalar_lea.hbm %s557_s6, 128 }
 0x141   :  { %p393_p11 = scmp.ne.s32.totalorder %s557_s6, %s392_s1  ;;  %p396_p12 = scmp.lt.u32.totalorder %s392_s1, %s557_s6 }
 0x143   :  { %p398_p13 = pnand %p396_p12, %p393_p11 }
 0x145   :  { %401 = shalt.err (!%p398_p13)
}
 0x146   :  { %215 = dma.vmem_to_hbm [thread:$0]  %s213_s16, 128, %s557_s6, [#allocation4]  }
 0x147   :  { %410 = dma.done.wait [#allocation4], 128  }
 0x148   :  { %411 = vsyncadd [#allocation4], 4294967168 }
 0x149   :  { %219 = vsyncpa [#allocation3], 1 }
 0x14a   :  { %220 = vsyncpa [#allocation6], 1 }
 0x14b   :  { %221 = vsyncpa [#allocation9], 1 }
 0x14c   :  { %222 = vsyncpa [#allocation12], 1 }
 0x14d   :  { %223 = vsyncpa [#allocation4], 1 }

</bundles_post_ra>
